<compile_context>
chip_gen: v6e
topology: v6e:2x2x1
jax: 0.10.0
libtpu: 0.0.40
codegen_flags: <defaults>
</compile_context>

<pallas_src>
import functools

import jax
import jax.numpy as jnp
from jax import lax
from jax.experimental import pallas as pl
from jax.experimental.pallas import tpu as pltpu


def _layernorm(x, gamma, beta, eps=1e-5):
    mu = jnp.mean(x, axis=-1, keepdims=True)
    var = jnp.mean((x - mu) ** 2, axis=-1, keepdims=True)
    return (x - mu) * lax.rsqrt(var + eps) * gamma + beta


def decoder_layer_kernel(
    x_ref, mask_ref, cos_ref, sin_ref,
    wqkv_ref, wo_ref, bo_ref,
    w12_ref, b12_ref, w3_ref, b3_ref,
    g1_ref, be1_ref, g2_ref, be2_ref,
    out_ref,
    *, heads, head_dim, block_b, seq_len, embed, ff_hidden,
):
    E, S, D, H = embed, seq_len, head_dim, ff_hidden
    R = block_b * S                      # rows processed per grid step

    x = x_ref[...]                       # (R, E) residual stream
    mask_add = mask_ref[...]             # (S, S) additive mask (-1e20 where masked)
    cos = cos_ref[...]                   # (R, E) per-head-tiled RoPE tables
    sin = sin_ref[...]

    # ---- LayerNorm 1 (pre-attention) ----
    xn = _layernorm(x, g1_ref[...], be1_ref[...])

    # ---- fused Q|K|V projection: one wide MXU matmul ----
    qkv = jnp.dot(xn, wqkv_ref[...], preferred_element_type=jnp.float32)   # (R, 3E)
    q_all = qkv[:, :E]
    k_all = qkv[:, E:2 * E]
    v_all = qkv[:, 2 * E:]

    # ---- interleaved RoPE applied once on the full width ----
    # Within each head (even head_dim) the roll-by-1 / roll-by-(E-1) trick never
    # crosses a head boundary, so one full-width pass replaces `heads` passes.
    idx = lax.broadcasted_iota(jnp.int32, (R, E), 1)
    even = (idx % 2) == 0

    def rope(t):
        t_next = pltpu.roll(t, shift=E - 1, axis=1)   # t[i+1]
        t_prev = pltpu.roll(t, shift=1, axis=1)       # t[i-1]
        t2 = jnp.where(even, -t_next, t_prev)
        return t * cos + t2 * sin

    scale = 1.0 / (float(D) ** 0.5)
    q_all = rope(q_all) * scale          # fold 1/sqrt(D) into q (not into (S,S) energy)
    k_all = rope(k_all)

    wo = wo_ref[...]                     # (E, E), loaded once

    # ---- attention: per (batch-in-block, head); accumulate through wo row-slices
    # so the head outputs never hit a lane-subslice scratch store.
    # NOTE: static Python loops are fine at these small head/batch counts; for
    # large counts switch to lax.fori_loop(..., unroll=True) to bound live ranges.
    attn_rows = []
    for b in range(block_b):
        rs = slice(b * S, (b + 1) * S)
        acc = jnp.zeros((S, E), jnp.float32)
        for h in range(heads):
            cs = slice(h * D, (h + 1) * D)
            q = q_all[rs, cs]                                   # (S, D)
            k = k_all[rs, cs]
            v = v_all[rs, cs]
            energy = jnp.dot(q, k.T, preferred_element_type=jnp.float32) + mask_add
            m = jnp.max(energy, axis=-1, keepdims=True)
            p = jnp.exp(energy - m)
            denom = jnp.sum(p, axis=-1, keepdims=True)
            # approx=True would route to the EUP, but exact keeps the f32
            # reference tolerance tight for this test.
            attn = p * pl.reciprocal(denom, approx=False)
            ov = jnp.dot(attn, v, preferred_element_type=jnp.float32)    # (S, D)
            acc = acc + jnp.dot(ov, wo[cs, :], preferred_element_type=jnp.float32)
        attn_rows.append(acc)
    attn_out = jnp.concatenate(attn_rows, axis=0) + bo_ref[...]          # (R, E)

    # dropout == identity in eval mode
    x1 = attn_out + x

    # ---- LayerNorm 2 + gated feed-forward (fc1|fc2 fused into one matmul) ----
    xn2 = _layernorm(x1, g2_ref[...], be2_ref[...])
    h12 = jnp.dot(xn2, w12_ref[...], preferred_element_type=jnp.float32) + b12_ref[...]
    gate = jax.nn.sigmoid(h12[:, :H])
    tr = jnp.maximum(h12[:, H:], 0.0)
    ff = jnp.dot(gate * tr, w3_ref[...], preferred_element_type=jnp.float32) + b3_ref[...]

    out_ref[...] = ff + x1


def decoder_layer(x, mask, params, heads):
    B, S, E = x.shape
    D = E // heads
    assert D * heads == E and D % 2 == 0, "head_dim must be even"
    H_ff = params["w1"].shape[1]

    # Pick how many batch rows to pack per grid step so M = block_b*S is large.
    target_rows = 256
    block_b = max(1, min(B, target_rows // max(S, 1)))
    while B % block_b:
        block_b -= 1
    R = block_b * S
    grid = (B // block_b,)

    # RoPE sin/cos tables (interleaved), tiled per head and per batch-in-block.
    pos = jnp.arange(S, dtype=jnp.float32)[:, None]
    ids = jnp.arange(D // 2, dtype=jnp.float32)
    theta = jnp.power(10000.0, -2.0 * ids / D)
    ang = pos * theta                                   # (S, D//2)
    cos = jnp.repeat(jnp.cos(ang), 2, axis=-1)          # (S, D)
    sin = jnp.repeat(jnp.sin(ang), 2, axis=-1)
    cos_full = jnp.tile(cos, (block_b, heads))          # (R, E)
    sin_full = jnp.tile(sin, (block_b, heads))

    # Additive mask, computed once in the wrapper (hoisted out of the head loop).
    mask_add = mask.astype(jnp.float32) * jnp.float32(-1e20)

    # Fused weights: Q|K|V and fc1|fc2.
    wqkv = jnp.concatenate([params["wq"], params["wk"], params["wv"]], axis=1)  # (E, 3E)
    w12 = jnp.concatenate([params["w1"], params["w2"]], axis=1)                 # (E, 2*H_ff)
    b12 = jnp.concatenate([params["b1"], params["b2"]], axis=1)                 # (1, 2*H_ff)

    # Flatten rows so the kernel sees a lane-dense 2-D slab (layout plumbing only).
    x2 = x.reshape(B * S, E)

    full = lambda shape: pl.BlockSpec(shape, lambda i: (0,) * len(shape))

    kernel = functools.partial(
        decoder_layer_kernel, heads=heads, head_dim=D,
        block_b=block_b, seq_len=S, embed=E, ff_hidden=H_ff)

    out2 = pl.pallas_call(
        kernel,
        out_shape=jax.ShapeDtypeStruct((B * S, E), jnp.float32),
        grid_spec=pltpu.PrefetchScalarGridSpec(
            num_scalar_prefetch=0,
            grid=grid,
            in_specs=[
                pl.BlockSpec((R, E), lambda i: (i, 0)),   # x rows
                full((S, S)),                             # additive mask
                full((R, E)),                             # cos (tiled)
                full((R, E)),                             # sin (tiled)
                full((E, 3 * E)),                         # wq|wk|wv
                full((E, E)),                             # wo
                full((1, E)),                             # bo
                full((E, 2 * H_ff)),                      # w1|w2
                full((1, 2 * H_ff)),                      # b1|b2
                full((H_ff, E)),                          # w3
                full((1, E)),                             # b3
                full((1, E)),                             # ln1 gamma
                full((1, E)),                             # ln1 beta
                full((1, E)),                             # ln2 gamma
                full((1, E)),                             # ln2 beta
            ],
            out_specs=pl.BlockSpec((R, E), lambda i: (i, 0)),
        ),
        # batch-block axis is independent -> shard across TensorCores on v7x
        compiler_params=pltpu.CompilerParams(dimension_semantics=("parallel",)),
    )(
        x2, mask_add, cos_full, sin_full,
        wqkv, params["wo"], params["bo"],
        w12, b12, params["w3"], params["b3"],
        params["g1"], params["be1"], params["g2"], params["be2"],
    )
    return out2.reshape(B, S, E)


def reference_decoder_layer(x, mask, p, heads):
    """Pure-JAX mirror of the PyTorch DecoderLayer.forward (eval mode)."""
    B, S, E = x.shape
    D = E // heads

    def ln(v, g, b):
        mu = v.mean(-1, keepdims=True)
        var = ((v - mu) ** 2).mean(-1, keepdims=True)
        return (v - mu) / jnp.sqrt(var + 1e-5) * g + b

    xn = ln(x, p["g1"], p["be1"])
    q = (xn @ p["wq"]).reshape(B, S, heads, D).transpose(0, 2, 1, 3)
    k = (xn @ p["wk"]).reshape(B, S, heads, D).transpose(0, 2, 1, 3)
    v = (xn @ p["wv"]).reshape(B, S, heads, D).transpose(0, 2, 1, 3)

    pos = jnp.arange(S, dtype=jnp.float32)[:, None]
    ids = jnp.arange(D // 2, dtype=jnp.float32)
    theta = jnp.power(10000.0, -2.0 * ids / D)
    ang = pos * theta
    cos_pos = jnp.repeat(jnp.cos(ang), 2, axis=-1)
    sin_pos = jnp.repeat(jnp.sin(ang), 2, axis=-1)

    def rope(t):
        t2 = jnp.stack([-t[..., 1::2], t[..., ::2]], axis=-1).reshape(t.shape)
        return t * cos_pos + t2 * sin_pos

    q, k = rope(q), rope(k)
    energy = jnp.einsum("bhqd,bhkd->bhqk", q, k)
    energy = jnp.where(mask == 1.0, -1e20, energy)
    attn = jax.nn.softmax(energy / D ** 0.5, axis=-1)
    o = jnp.einsum("bhqk,bhkd->bhqd", attn, v)
    o = o.transpose(0, 2, 1, 3).reshape(B, S, E)
    o = o @ p["wo"] + p["bo"]
    x1 = o + x
    xn2 = ln(x1, p["g2"], p["be2"])
    gate = jax.nn.sigmoid(xn2 @ p["w1"] + p["b1"])
    tr = jax.nn.relu(xn2 @ p["w2"] + p["b2"])
    ff = (gate * tr) @ p["w3"] + p["b3"]
    return ff + x1


if __name__ == "__main__":
    B, S, E, heads, H_ff = 2, 8, 32, 4, 64

    key = jax.random.PRNGKey(0)
    ks = jax.random.split(key, 12)
    sc = 0.1
    params = {
        "wq": jax.random.normal(ks[0], (E, E), jnp.float32) * sc,
        "wk": jax.random.normal(ks[1], (E, E), jnp.float32) * sc,
        "wv": jax.random.normal(ks[2], (E, E), jnp.float32) * sc,
        "wo": jax.random.normal(ks[3], (E, E), jnp.float32) * sc,
        "bo": jax.random.normal(ks[4], (1, E), jnp.float32) * sc,
        "w1": jax.random.normal(ks[5], (E, H_ff), jnp.float32) * sc,
        "b1": jax.random.normal(ks[6], (1, H_ff), jnp.float32) * sc,
        "w2": jax.random.normal(ks[7], (E, H_ff), jnp.float32) * sc,
        "b2": jax.random.normal(ks[8], (1, H_ff), jnp.float32) * sc,
        "w3": jax.random.normal(ks[9], (H_ff, E), jnp.float32) * sc,
        "b3": jax.random.normal(ks[10], (1, E), jnp.float32) * sc,
        "g1": jnp.ones((1, E), jnp.float32),
        "be1": jnp.zeros((1, E), jnp.float32),
        "g2": jnp.ones((1, E), jnp.float32),
        "be2": jnp.zeros((1, E), jnp.float32),
    }

    x = jax.random.normal(ks[11], (B, S, E), jnp.float32)
    # causal mask: 1.0 where the position should be masked (j > i)
    i = jnp.arange(S)[:, None]
    j = jnp.arange(S)[None, :]
    mask = (j > i).astype(jnp.float32)        # (S, S), broadcast over batch & heads

    out = decoder_layer(x, mask, params, heads)
    out = jax.block_until_ready(out)

    ref = reference_decoder_layer(x, mask, params, heads)
    assert out.shape == (B, S, E)
    assert jnp.allclose(out, ref, rtol=1e-4, atol=1e-4), float(jnp.abs(out - ref).max())

    print("KERNEL_OK")
</pallas_src>

<mosaic_0001>
module attributes {stable_mosaic.version = 11 : i64} {
  func.func @decoder_layer_kernel(%arg0: i32, %arg1: memref<16x32xf32, #tpu.memory_space<vmem>>, %arg2: memref<8x8xf32, #tpu.memory_space<vmem>>, %arg3: memref<16x32xf32, #tpu.memory_space<vmem>>, %arg4: memref<16x32xf32, #tpu.memory_space<vmem>>, %arg5: memref<32x96xf32, #tpu.memory_space<vmem>>, %arg6: memref<32x32xf32, #tpu.memory_space<vmem>>, %arg7: memref<1x32xf32, #tpu.memory_space<vmem>>, %arg8: memref<32x128xf32, #tpu.memory_space<vmem>>, %arg9: memref<1x128xf32, #tpu.memory_space<vmem>>, %arg10: memref<64x32xf32, #tpu.memory_space<vmem>>, %arg11: memref<1x32xf32, #tpu.memory_space<vmem>>, %arg12: memref<1x32xf32, #tpu.memory_space<vmem>>, %arg13: memref<1x32xf32, #tpu.memory_space<vmem>>, %arg14: memref<1x32xf32, #tpu.memory_space<vmem>>, %arg15: memref<1x32xf32, #tpu.memory_space<vmem>>, %arg16: memref<16x32xf32, #tpu.memory_space<vmem>>) attributes {dimension_semantics = [#tpu.dimension_semantics<parallel>], iteration_bounds = array<i64: 1>, scalar_prefetch = 0 : i64, scratch_operands = 0 : i64, tpu.core_type = #tpu.core_type<tc>, window_params = [{transform_indices = @transform_0, window_bounds = array<i64: 16, 32>}, {pipeline_mode = #tpu.pipeline_mode<synchronous>, transform_indices = @transform_1, window_bounds = array<i64: 8, 8>}, {pipeline_mode = #tpu.pipeline_mode<synchronous>, transform_indices = @transform_2, window_bounds = array<i64: 16, 32>}, {pipeline_mode = #tpu.pipeline_mode<synchronous>, transform_indices = @transform_3, window_bounds = array<i64: 16, 32>}, {pipeline_mode = #tpu.pipeline_mode<synchronous>, transform_indices = @transform_4, window_bounds = array<i64: 32, 96>}, {pipeline_mode = #tpu.pipeline_mode<synchronous>, transform_indices = @transform_5, window_bounds = array<i64: 32, 32>}, {pipeline_mode = #tpu.pipeline_mode<synchronous>, transform_indices = @transform_6, window_bounds = array<i64: 1, 32>}, {pipeline_mode = #tpu.pipeline_mode<synchronous>, transform_indices = @transform_7, window_bounds = array<i64: 32, 128>}, {pipeline_mode = #tpu.pipeline_mode<synchronous>, transform_indices = @transform_8, window_bounds = array<i64: 1, 128>}, {pipeline_mode = #tpu.pipeline_mode<synchronous>, transform_indices = @transform_9, window_bounds = array<i64: 64, 32>}, {pipeline_mode = #tpu.pipeline_mode<synchronous>, transform_indices = @transform_10, window_bounds = array<i64: 1, 32>}, {pipeline_mode = #tpu.pipeline_mode<synchronous>, transform_indices = @transform_11, window_bounds = array<i64: 1, 32>}, {pipeline_mode = #tpu.pipeline_mode<synchronous>, transform_indices = @transform_12, window_bounds = array<i64: 1, 32>}, {pipeline_mode = #tpu.pipeline_mode<synchronous>, transform_indices = @transform_13, window_bounds = array<i64: 1, 32>}, {pipeline_mode = #tpu.pipeline_mode<synchronous>, transform_indices = @transform_14, window_bounds = array<i64: 1, 32>}, {transform_indices = @transform_15, window_bounds = array<i64: 16, 32>}]} {
    %c0 = arith.constant 0 : index
    %c0_0 = arith.constant 0 : index
    %0 = vector.load %arg1[%c0, %c0_0] : memref<16x32xf32, #tpu.memory_space<vmem>>, vector<16x32xf32>
    %c0_1 = arith.constant 0 : index
    %c0_2 = arith.constant 0 : index
    %1 = vector.load %arg2[%c0_1, %c0_2] : memref<8x8xf32, #tpu.memory_space<vmem>>, vector<8x8xf32>
    %c0_3 = arith.constant 0 : index
    %c0_4 = arith.constant 0 : index
    %2 = vector.load %arg3[%c0_3, %c0_4] : memref<16x32xf32, #tpu.memory_space<vmem>>, vector<16x32xf32>
    %c0_5 = arith.constant 0 : index
    %c0_6 = arith.constant 0 : index
    %3 = vector.load %arg4[%c0_5, %c0_6] : memref<16x32xf32, #tpu.memory_space<vmem>>, vector<16x32xf32>
    %c0_7 = arith.constant 0 : index
    %c0_8 = arith.constant 0 : index
    %4 = vector.load %arg12[%c0_7, %c0_8] : memref<1x32xf32, #tpu.memory_space<vmem>>, vector<1x32xf32>
    %c0_9 = arith.constant 0 : index
    %c0_10 = arith.constant 0 : index
    %5 = vector.load %arg13[%c0_9, %c0_10] : memref<1x32xf32, #tpu.memory_space<vmem>>, vector<1x32xf32>
    %cst = arith.constant dense<0.000000e+00> : vector<16xf32>
    %6 = vector.multi_reduction <add>, %0, %cst [1] : vector<16x32xf32> to vector<16xf32>
    %7 = vector.shape_cast %6 : vector<16xf32> to vector<16x1xf32>
    %cst_11 = arith.constant 3.200000e+01 : f32
    %8 = vector.broadcast %cst_11 : f32 to vector<16x1xf32>
    %9 = arith.divf %7, %8 : vector<16x1xf32>
    %10 = vector.broadcast %9 : vector<16x1xf32> to vector<16x32xf32>
    %11 = arith.subf %0, %10 : vector<16x32xf32>
    %12 = arith.mulf %11, %11 : vector<16x32xf32>
    %cst_12 = arith.constant dense<0.000000e+00> : vector<16xf32>
    %13 = vector.multi_reduction <add>, %12, %cst_12 [1] : vector<16x32xf32> to vector<16xf32>
    %14 = vector.shape_cast %13 : vector<16xf32> to vector<16x1xf32>
    %cst_13 = arith.constant 3.200000e+01 : f32
    %15 = vector.broadcast %cst_13 : f32 to vector<16x1xf32>
    %16 = arith.divf %14, %15 : vector<16x1xf32>
    %17 = vector.broadcast %9 : vector<16x1xf32> to vector<16x32xf32>
    %18 = arith.subf %0, %17 : vector<16x32xf32>
    %cst_14 = arith.constant 9.99999974E-6 : f32
    %19 = vector.broadcast %cst_14 : f32 to vector<16x1xf32>
    %20 = arith.addf %16, %19 : vector<16x1xf32>
    %21 = math.rsqrt %20 : vector<16x1xf32>
    %22 = vector.broadcast %21 : vector<16x1xf32> to vector<16x32xf32>
    %23 = arith.mulf %18, %22 : vector<16x32xf32>
    %24 = vector.broadcast %4 : vector<1x32xf32> to vector<16x32xf32>
    %25 = arith.mulf %23, %24 : vector<16x32xf32>
    %26 = vector.broadcast %5 : vector<1x32xf32> to vector<16x32xf32>
    %27 = arith.addf %25, %26 : vector<16x32xf32>
    %c0_15 = arith.constant 0 : index
    %c0_16 = arith.constant 0 : index
    %28 = vector.load %arg5[%c0_15, %c0_16] : memref<32x96xf32, #tpu.memory_space<vmem>>, vector<32x96xf32>
    %cst_17 = arith.constant dense<0.000000e+00> : vector<16x96xf32>
    %29 = tpu.matmul %27, %28, %cst_17 {dimension_numbers = #tpu.dot_dimension_numbers<[1], [0], [0], [1], [0, 0, 1, 1], [], []>} : vector<16x32xf32>, vector<32x96xf32>, vector<16x96xf32> -> vector<16x96xf32>
    %30 = vector.extract_strided_slice %29 {offsets = [0, 0], sizes = [16, 32], strides = [1, 1]} : vector<16x96xf32> to vector<16x32xf32>
    %31 = vector.extract_strided_slice %29 {offsets = [0, 32], sizes = [16, 32], strides = [1, 1]} : vector<16x96xf32> to vector<16x32xf32>
    %32 = vector.extract_strided_slice %29 {offsets = [0, 64], sizes = [16, 32], strides = [1, 1]} : vector<16x96xf32> to vector<16x32xf32>
    %33 = tpu.iota {dimensions = array<i32: 1>} : vector<16x32xi32>
    %c2_i32 = arith.constant 2 : i32
    %c0_i32 = arith.constant 0 : i32
    %34 = arith.cmpi eq, %c2_i32, %c0_i32 : i32
    %c1_i32 = arith.constant 1 : i32
    %35 = arith.select %34, %c1_i32, %c2_i32 : i32
    %36 = vector.broadcast %35 : i32 to vector<16x32xi32>
    %37 = arith.remsi %33, %36 : vector<16x32xi32>
    %c0_i32_18 = arith.constant 0 : i32
    %38 = vector.broadcast %c0_i32_18 : i32 to vector<16x32xi32>
    %39 = arith.cmpi ne, %37, %38 : vector<16x32xi32>
    %c0_i32_19 = arith.constant 0 : i32
    %40 = vector.broadcast %c0_i32_19 : i32 to vector<16x32xi32>
    %41 = arith.cmpi slt, %37, %40 : vector<16x32xi32>
    %c0_i32_20 = arith.constant 0 : i32
    %42 = arith.cmpi slt, %35, %c0_i32_20 : i32
    %43 = vector.broadcast %42 : i1 to vector<16x32xi1>
    %44 = vector.broadcast %43 : vector<16x32xi1> to vector<16x32xi1>
    %45 = arith.xori %41, %44 : vector<16x32xi1>
    %46 = arith.andi %45, %39 : vector<16x32xi1>
    %47 = vector.broadcast %35 : i32 to vector<16x32xi32>
    %48 = arith.addi %37, %47 : vector<16x32xi32>
    %49 = arith.select %46, %48, %37 : vector<16x32xi1>, vector<16x32xi32>
    %c0_i32_21 = arith.constant 0 : i32
    %50 = vector.broadcast %c0_i32_21 : i32 to vector<16x32xi32>
    %51 = arith.cmpi eq, %49, %50 : vector<16x32xi32>
    %c31_i32 = arith.constant 31 : i32
    %52 = tpu.dynamic_rotate %30 by %c31_i32 dim 1 : vector<16x32xf32>, i32 -> vector<16x32xf32>
    %c1_i32_22 = arith.constant 1 : i32
    %53 = tpu.dynamic_rotate %30 by %c1_i32_22 dim 1 : vector<16x32xf32>, i32 -> vector<16x32xf32>
    %cst_23 = arith.constant 0.000000e+00 : f32
    %54 = vector.broadcast %cst_23 : f32 to vector<16x32xf32>
    %55 = arith.subf %54, %52 : vector<16x32xf32>
    %56 = arith.select %51, %55, %53 : vector<16x32xi1>, vector<16x32xf32>
    %57 = arith.mulf %30, %2 : vector<16x32xf32>
    %58 = arith.mulf %56, %3 : vector<16x32xf32>
    %59 = arith.addf %57, %58 : vector<16x32xf32>
    %cst_24 = arith.constant 0.353553385 : f32
    %60 = vector.broadcast %cst_24 : f32 to vector<16x32xf32>
    %61 = arith.mulf %59, %60 : vector<16x32xf32>
    %c31_i32_25 = arith.constant 31 : i32
    %62 = tpu.dynamic_rotate %31 by %c31_i32_25 dim 1 : vector<16x32xf32>, i32 -> vector<16x32xf32>
    %c1_i32_26 = arith.constant 1 : i32
    %63 = tpu.dynamic_rotate %31 by %c1_i32_26 dim 1 : vector<16x32xf32>, i32 -> vector<16x32xf32>
    %cst_27 = arith.constant 0.000000e+00 : f32
    %64 = vector.broadcast %cst_27 : f32 to vector<16x32xf32>
    %65 = arith.subf %64, %62 : vector<16x32xf32>
    %66 = arith.select %51, %65, %63 : vector<16x32xi1>, vector<16x32xf32>
    %67 = arith.mulf %31, %2 : vector<16x32xf32>
    %68 = arith.mulf %66, %3 : vector<16x32xf32>
    %69 = arith.addf %67, %68 : vector<16x32xf32>
    %c0_28 = arith.constant 0 : index
    %c0_29 = arith.constant 0 : index
    %70 = vector.load %arg6[%c0_28, %c0_29] : memref<32x32xf32, #tpu.memory_space<vmem>>, vector<32x32xf32>
    %cst_30 = arith.constant 0.000000e+00 : f32
    %71 = vector.broadcast %cst_30 : f32 to vector<8x32xf32>
    %72 = vector.extract_strided_slice %61 {offsets = [0, 0], sizes = [8, 8], strides = [1, 1]} : vector<16x32xf32> to vector<8x8xf32>
    %73 = vector.extract_strided_slice %69 {offsets = [0, 0], sizes = [8, 8], strides = [1, 1]} : vector<16x32xf32> to vector<8x8xf32>
    %74 = vector.extract_strided_slice %32 {offsets = [0, 0], sizes = [8, 8], strides = [1, 1]} : vector<16x32xf32> to vector<8x8xf32>
    %75 = tpu.transpose %73, [1, 0] : vector<8x8xf32> -> vector<8x8xf32>
    %cst_31 = arith.constant dense<0.000000e+00> : vector<8x8xf32>
    %76 = tpu.matmul %72, %75, %cst_31 {dimension_numbers = #tpu.dot_dimension_numbers<[1], [0], [0], [1], [0, 0, 1, 1], [], []>} : vector<8x8xf32>, vector<8x8xf32>, vector<8x8xf32> -> vector<8x8xf32>
    %77 = arith.addf %76, %1 : vector<8x8xf32>
    %cst_32 = arith.constant dense<0xFF800000> : vector<8xf32>
    %78 = vector.multi_reduction <maximumf>, %77, %cst_32 [1] : vector<8x8xf32> to vector<8xf32>
    %79 = vector.shape_cast %78 : vector<8xf32> to vector<8x1xf32>
    %80 = vector.broadcast %79 : vector<8x1xf32> to vector<8x8xf32>
    %81 = arith.subf %77, %80 : vector<8x8xf32>
    %82 = math.exp %81 : vector<8x8xf32>
    %cst_33 = arith.constant dense<0.000000e+00> : vector<8xf32>
    %83 = vector.multi_reduction <add>, %82, %cst_33 [1] : vector<8x8xf32> to vector<8xf32>
    %84 = vector.shape_cast %83 : vector<8xf32> to vector<8x1xf32>
    %85 = tpu.reciprocal %84 : vector<8x1xf32> -> vector<8x1xf32>
    %86 = vector.broadcast %85 : vector<8x1xf32> to vector<8x8xf32>
    %87 = arith.mulf %82, %86 : vector<8x8xf32>
    %cst_34 = arith.constant dense<0.000000e+00> : vector<8x8xf32>
    %88 = tpu.matmul %87, %74, %cst_34 {dimension_numbers = #tpu.dot_dimension_numbers<[1], [0], [0], [1], [0, 0, 1, 1], [], []>} : vector<8x8xf32>, vector<8x8xf32>, vector<8x8xf32> -> vector<8x8xf32>
    %89 = vector.extract_strided_slice %70 {offsets = [0, 0], sizes = [8, 32], strides = [1, 1]} : vector<32x32xf32> to vector<8x32xf32>
    %cst_35 = arith.constant dense<0.000000e+00> : vector<8x32xf32>
    %90 = tpu.matmul %88, %89, %cst_35 {dimension_numbers = #tpu.dot_dimension_numbers<[1], [0], [0], [1], [0, 0, 1, 1], [], []>} : vector<8x8xf32>, vector<8x32xf32>, vector<8x32xf32> -> vector<8x32xf32>
    %91 = arith.addf %71, %90 : vector<8x32xf32>
    %92 = vector.extract_strided_slice %61 {offsets = [0, 8], sizes = [8, 8], strides = [1, 1]} : vector<16x32xf32> to vector<8x8xf32>
    %93 = vector.extract_strided_slice %69 {offsets = [0, 8], sizes = [8, 8], strides = [1, 1]} : vector<16x32xf32> to vector<8x8xf32>
    %94 = vector.extract_strided_slice %32 {offsets = [0, 8], sizes = [8, 8], strides = [1, 1]} : vector<16x32xf32> to vector<8x8xf32>
    %95 = tpu.transpose %93, [1, 0] : vector<8x8xf32> -> vector<8x8xf32>
    %cst_36 = arith.constant dense<0.000000e+00> : vector<8x8xf32>
    %96 = tpu.matmul %92, %95, %cst_36 {dimension_numbers = #tpu.dot_dimension_numbers<[1], [0], [0], [1], [0, 0, 1, 1], [], []>} : vector<8x8xf32>, vector<8x8xf32>, vector<8x8xf32> -> vector<8x8xf32>
    %97 = arith.addf %96, %1 : vector<8x8xf32>
    %cst_37 = arith.constant dense<0xFF800000> : vector<8xf32>
    %98 = vector.multi_reduction <maximumf>, %97, %cst_37 [1] : vector<8x8xf32> to vector<8xf32>
    %99 = vector.shape_cast %98 : vector<8xf32> to vector<8x1xf32>
    %100 = vector.broadcast %99 : vector<8x1xf32> to vector<8x8xf32>
    %101 = arith.subf %97, %100 : vector<8x8xf32>
    %102 = math.exp %101 : vector<8x8xf32>
    %cst_38 = arith.constant dense<0.000000e+00> : vector<8xf32>
    %103 = vector.multi_reduction <add>, %102, %cst_38 [1] : vector<8x8xf32> to vector<8xf32>
    %104 = vector.shape_cast %103 : vector<8xf32> to vector<8x1xf32>
    %105 = tpu.reciprocal %104 : vector<8x1xf32> -> vector<8x1xf32>
    %106 = vector.broadcast %105 : vector<8x1xf32> to vector<8x8xf32>
    %107 = arith.mulf %102, %106 : vector<8x8xf32>
    %cst_39 = arith.constant dense<0.000000e+00> : vector<8x8xf32>
    %108 = tpu.matmul %107, %94, %cst_39 {dimension_numbers = #tpu.dot_dimension_numbers<[1], [0], [0], [1], [0, 0, 1, 1], [], []>} : vector<8x8xf32>, vector<8x8xf32>, vector<8x8xf32> -> vector<8x8xf32>
    %109 = vector.extract_strided_slice %70 {offsets = [8, 0], sizes = [8, 32], strides = [1, 1]} : vector<32x32xf32> to vector<8x32xf32>
    %cst_40 = arith.constant dense<0.000000e+00> : vector<8x32xf32>
    %110 = tpu.matmul %108, %109, %cst_40 {dimension_numbers = #tpu.dot_dimension_numbers<[1], [0], [0], [1], [0, 0, 1, 1], [], []>} : vector<8x8xf32>, vector<8x32xf32>, vector<8x32xf32> -> vector<8x32xf32>
    %111 = arith.addf %91, %110 : vector<8x32xf32>
    %112 = vector.extract_strided_slice %61 {offsets = [0, 16], sizes = [8, 8], strides = [1, 1]} : vector<16x32xf32> to vector<8x8xf32>
    %113 = vector.extract_strided_slice %69 {offsets = [0, 16], sizes = [8, 8], strides = [1, 1]} : vector<16x32xf32> to vector<8x8xf32>
    %114 = vector.extract_strided_slice %32 {offsets = [0, 16], sizes = [8, 8], strides = [1, 1]} : vector<16x32xf32> to vector<8x8xf32>
    %115 = tpu.transpose %113, [1, 0] : vector<8x8xf32> -> vector<8x8xf32>
    %cst_41 = arith.constant dense<0.000000e+00> : vector<8x8xf32>
    %116 = tpu.matmul %112, %115, %cst_41 {dimension_numbers = #tpu.dot_dimension_numbers<[1], [0], [0], [1], [0, 0, 1, 1], [], []>} : vector<8x8xf32>, vector<8x8xf32>, vector<8x8xf32> -> vector<8x8xf32>
    %117 = arith.addf %116, %1 : vector<8x8xf32>
    %cst_42 = arith.constant dense<0xFF800000> : vector<8xf32>
    %118 = vector.multi_reduction <maximumf>, %117, %cst_42 [1] : vector<8x8xf32> to vector<8xf32>
    %119 = vector.shape_cast %118 : vector<8xf32> to vector<8x1xf32>
    %120 = vector.broadcast %119 : vector<8x1xf32> to vector<8x8xf32>
    %121 = arith.subf %117, %120 : vector<8x8xf32>
    %122 = math.exp %121 : vector<8x8xf32>
    %cst_43 = arith.constant dense<0.000000e+00> : vector<8xf32>
    %123 = vector.multi_reduction <add>, %122, %cst_43 [1] : vector<8x8xf32> to vector<8xf32>
    %124 = vector.shape_cast %123 : vector<8xf32> to vector<8x1xf32>
    %125 = tpu.reciprocal %124 : vector<8x1xf32> -> vector<8x1xf32>
    %126 = vector.broadcast %125 : vector<8x1xf32> to vector<8x8xf32>
    %127 = arith.mulf %122, %126 : vector<8x8xf32>
    %cst_44 = arith.constant dense<0.000000e+00> : vector<8x8xf32>
    %128 = tpu.matmul %127, %114, %cst_44 {dimension_numbers = #tpu.dot_dimension_numbers<[1], [0], [0], [1], [0, 0, 1, 1], [], []>} : vector<8x8xf32>, vector<8x8xf32>, vector<8x8xf32> -> vector<8x8xf32>
    %129 = vector.extract_strided_slice %70 {offsets = [16, 0], sizes = [8, 32], strides = [1, 1]} : vector<32x32xf32> to vector<8x32xf32>
    %cst_45 = arith.constant dense<0.000000e+00> : vector<8x32xf32>
    %130 = tpu.matmul %128, %129, %cst_45 {dimension_numbers = #tpu.dot_dimension_numbers<[1], [0], [0], [1], [0, 0, 1, 1], [], []>} : vector<8x8xf32>, vector<8x32xf32>, vector<8x32xf32> -> vector<8x32xf32>
    %131 = arith.addf %111, %130 : vector<8x32xf32>
    %132 = vector.extract_strided_slice %61 {offsets = [0, 24], sizes = [8, 8], strides = [1, 1]} : vector<16x32xf32> to vector<8x8xf32>
    %133 = vector.extract_strided_slice %69 {offsets = [0, 24], sizes = [8, 8], strides = [1, 1]} : vector<16x32xf32> to vector<8x8xf32>
    %134 = vector.extract_strided_slice %32 {offsets = [0, 24], sizes = [8, 8], strides = [1, 1]} : vector<16x32xf32> to vector<8x8xf32>
    %135 = tpu.transpose %133, [1, 0] : vector<8x8xf32> -> vector<8x8xf32>
    %cst_46 = arith.constant dense<0.000000e+00> : vector<8x8xf32>
    %136 = tpu.matmul %132, %135, %cst_46 {dimension_numbers = #tpu.dot_dimension_numbers<[1], [0], [0], [1], [0, 0, 1, 1], [], []>} : vector<8x8xf32>, vector<8x8xf32>, vector<8x8xf32> -> vector<8x8xf32>
    %137 = arith.addf %136, %1 : vector<8x8xf32>
    %cst_47 = arith.constant dense<0xFF800000> : vector<8xf32>
    %138 = vector.multi_reduction <maximumf>, %137, %cst_47 [1] : vector<8x8xf32> to vector<8xf32>
    %139 = vector.shape_cast %138 : vector<8xf32> to vector<8x1xf32>
    %140 = vector.broadcast %139 : vector<8x1xf32> to vector<8x8xf32>
    %141 = arith.subf %137, %140 : vector<8x8xf32>
    %142 = math.exp %141 : vector<8x8xf32>
    %cst_48 = arith.constant dense<0.000000e+00> : vector<8xf32>
    %143 = vector.multi_reduction <add>, %142, %cst_48 [1] : vector<8x8xf32> to vector<8xf32>
    %144 = vector.shape_cast %143 : vector<8xf32> to vector<8x1xf32>
    %145 = tpu.reciprocal %144 : vector<8x1xf32> -> vector<8x1xf32>
    %146 = vector.broadcast %145 : vector<8x1xf32> to vector<8x8xf32>
    %147 = arith.mulf %142, %146 : vector<8x8xf32>
    %cst_49 = arith.constant dense<0.000000e+00> : vector<8x8xf32>
    %148 = tpu.matmul %147, %134, %cst_49 {dimension_numbers = #tpu.dot_dimension_numbers<[1], [0], [0], [1], [0, 0, 1, 1], [], []>} : vector<8x8xf32>, vector<8x8xf32>, vector<8x8xf32> -> vector<8x8xf32>
    %149 = vector.extract_strided_slice %70 {offsets = [24, 0], sizes = [8, 32], strides = [1, 1]} : vector<32x32xf32> to vector<8x32xf32>
    %cst_50 = arith.constant dense<0.000000e+00> : vector<8x32xf32>
    %150 = tpu.matmul %148, %149, %cst_50 {dimension_numbers = #tpu.dot_dimension_numbers<[1], [0], [0], [1], [0, 0, 1, 1], [], []>} : vector<8x8xf32>, vector<8x32xf32>, vector<8x32xf32> -> vector<8x32xf32>
    %151 = arith.addf %131, %150 : vector<8x32xf32>
    %cst_51 = arith.constant 0.000000e+00 : f32
    %152 = vector.broadcast %cst_51 : f32 to vector<8x32xf32>
    %153 = vector.extract_strided_slice %61 {offsets = [8, 0], sizes = [8, 8], strides = [1, 1]} : vector<16x32xf32> to vector<8x8xf32>
    %154 = vector.extract_strided_slice %69 {offsets = [8, 0], sizes = [8, 8], strides = [1, 1]} : vector<16x32xf32> to vector<8x8xf32>
    %155 = vector.extract_strided_slice %32 {offsets = [8, 0], sizes = [8, 8], strides = [1, 1]} : vector<16x32xf32> to vector<8x8xf32>
    %156 = tpu.transpose %154, [1, 0] : vector<8x8xf32> -> vector<8x8xf32>
    %cst_52 = arith.constant dense<0.000000e+00> : vector<8x8xf32>
    %157 = tpu.matmul %153, %156, %cst_52 {dimension_numbers = #tpu.dot_dimension_numbers<[1], [0], [0], [1], [0, 0, 1, 1], [], []>} : vector<8x8xf32>, vector<8x8xf32>, vector<8x8xf32> -> vector<8x8xf32>
    %158 = arith.addf %157, %1 : vector<8x8xf32>
    %cst_53 = arith.constant dense<0xFF800000> : vector<8xf32>
    %159 = vector.multi_reduction <maximumf>, %158, %cst_53 [1] : vector<8x8xf32> to vector<8xf32>
    %160 = vector.shape_cast %159 : vector<8xf32> to vector<8x1xf32>
    %161 = vector.broadcast %160 : vector<8x1xf32> to vector<8x8xf32>
    %162 = arith.subf %158, %161 : vector<8x8xf32>
    %163 = math.exp %162 : vector<8x8xf32>
    %cst_54 = arith.constant dense<0.000000e+00> : vector<8xf32>
    %164 = vector.multi_reduction <add>, %163, %cst_54 [1] : vector<8x8xf32> to vector<8xf32>
    %165 = vector.shape_cast %164 : vector<8xf32> to vector<8x1xf32>
    %166 = tpu.reciprocal %165 : vector<8x1xf32> -> vector<8x1xf32>
    %167 = vector.broadcast %166 : vector<8x1xf32> to vector<8x8xf32>
    %168 = arith.mulf %163, %167 : vector<8x8xf32>
    %cst_55 = arith.constant dense<0.000000e+00> : vector<8x8xf32>
    %169 = tpu.matmul %168, %155, %cst_55 {dimension_numbers = #tpu.dot_dimension_numbers<[1], [0], [0], [1], [0, 0, 1, 1], [], []>} : vector<8x8xf32>, vector<8x8xf32>, vector<8x8xf32> -> vector<8x8xf32>
    %170 = vector.extract_strided_slice %70 {offsets = [0, 0], sizes = [8, 32], strides = [1, 1]} : vector<32x32xf32> to vector<8x32xf32>
    %cst_56 = arith.constant dense<0.000000e+00> : vector<8x32xf32>
    %171 = tpu.matmul %169, %170, %cst_56 {dimension_numbers = #tpu.dot_dimension_numbers<[1], [0], [0], [1], [0, 0, 1, 1], [], []>} : vector<8x8xf32>, vector<8x32xf32>, vector<8x32xf32> -> vector<8x32xf32>
    %172 = arith.addf %152, %171 : vector<8x32xf32>
    %173 = vector.extract_strided_slice %61 {offsets = [8, 8], sizes = [8, 8], strides = [1, 1]} : vector<16x32xf32> to vector<8x8xf32>
    %174 = vector.extract_strided_slice %69 {offsets = [8, 8], sizes = [8, 8], strides = [1, 1]} : vector<16x32xf32> to vector<8x8xf32>
    %175 = vector.extract_strided_slice %32 {offsets = [8, 8], sizes = [8, 8], strides = [1, 1]} : vector<16x32xf32> to vector<8x8xf32>
    %176 = tpu.transpose %174, [1, 0] : vector<8x8xf32> -> vector<8x8xf32>
    %cst_57 = arith.constant dense<0.000000e+00> : vector<8x8xf32>
    %177 = tpu.matmul %173, %176, %cst_57 {dimension_numbers = #tpu.dot_dimension_numbers<[1], [0], [0], [1], [0, 0, 1, 1], [], []>} : vector<8x8xf32>, vector<8x8xf32>, vector<8x8xf32> -> vector<8x8xf32>
    %178 = arith.addf %177, %1 : vector<8x8xf32>
    %cst_58 = arith.constant dense<0xFF800000> : vector<8xf32>
    %179 = vector.multi_reduction <maximumf>, %178, %cst_58 [1] : vector<8x8xf32> to vector<8xf32>
    %180 = vector.shape_cast %179 : vector<8xf32> to vector<8x1xf32>
    %181 = vector.broadcast %180 : vector<8x1xf32> to vector<8x8xf32>
    %182 = arith.subf %178, %181 : vector<8x8xf32>
    %183 = math.exp %182 : vector<8x8xf32>
    %cst_59 = arith.constant dense<0.000000e+00> : vector<8xf32>
    %184 = vector.multi_reduction <add>, %183, %cst_59 [1] : vector<8x8xf32> to vector<8xf32>
    %185 = vector.shape_cast %184 : vector<8xf32> to vector<8x1xf32>
    %186 = tpu.reciprocal %185 : vector<8x1xf32> -> vector<8x1xf32>
    %187 = vector.broadcast %186 : vector<8x1xf32> to vector<8x8xf32>
    %188 = arith.mulf %183, %187 : vector<8x8xf32>
    %cst_60 = arith.constant dense<0.000000e+00> : vector<8x8xf32>
    %189 = tpu.matmul %188, %175, %cst_60 {dimension_numbers = #tpu.dot_dimension_numbers<[1], [0], [0], [1], [0, 0, 1, 1], [], []>} : vector<8x8xf32>, vector<8x8xf32>, vector<8x8xf32> -> vector<8x8xf32>
    %190 = vector.extract_strided_slice %70 {offsets = [8, 0], sizes = [8, 32], strides = [1, 1]} : vector<32x32xf32> to vector<8x32xf32>
    %cst_61 = arith.constant dense<0.000000e+00> : vector<8x32xf32>
    %191 = tpu.matmul %189, %190, %cst_61 {dimension_numbers = #tpu.dot_dimension_numbers<[1], [0], [0], [1], [0, 0, 1, 1], [], []>} : vector<8x8xf32>, vector<8x32xf32>, vector<8x32xf32> -> vector<8x32xf32>
    %192 = arith.addf %172, %191 : vector<8x32xf32>
    %193 = vector.extract_strided_slice %61 {offsets = [8, 16], sizes = [8, 8], strides = [1, 1]} : vector<16x32xf32> to vector<8x8xf32>
    %194 = vector.extract_strided_slice %69 {offsets = [8, 16], sizes = [8, 8], strides = [1, 1]} : vector<16x32xf32> to vector<8x8xf32>
    %195 = vector.extract_strided_slice %32 {offsets = [8, 16], sizes = [8, 8], strides = [1, 1]} : vector<16x32xf32> to vector<8x8xf32>
    %196 = tpu.transpose %194, [1, 0] : vector<8x8xf32> -> vector<8x8xf32>
    %cst_62 = arith.constant dense<0.000000e+00> : vector<8x8xf32>
    %197 = tpu.matmul %193, %196, %cst_62 {dimension_numbers = #tpu.dot_dimension_numbers<[1], [0], [0], [1], [0, 0, 1, 1], [], []>} : vector<8x8xf32>, vector<8x8xf32>, vector<8x8xf32> -> vector<8x8xf32>
    %198 = arith.addf %197, %1 : vector<8x8xf32>
    %cst_63 = arith.constant dense<0xFF800000> : vector<8xf32>
    %199 = vector.multi_reduction <maximumf>, %198, %cst_63 [1] : vector<8x8xf32> to vector<8xf32>
    %200 = vector.shape_cast %199 : vector<8xf32> to vector<8x1xf32>
    %201 = vector.broadcast %200 : vector<8x1xf32> to vector<8x8xf32>
    %202 = arith.subf %198, %201 : vector<8x8xf32>
    %203 = math.exp %202 : vector<8x8xf32>
    %cst_64 = arith.constant dense<0.000000e+00> : vector<8xf32>
    %204 = vector.multi_reduction <add>, %203, %cst_64 [1] : vector<8x8xf32> to vector<8xf32>
    %205 = vector.shape_cast %204 : vector<8xf32> to vector<8x1xf32>
    %206 = tpu.reciprocal %205 : vector<8x1xf32> -> vector<8x1xf32>
    %207 = vector.broadcast %206 : vector<8x1xf32> to vector<8x8xf32>
    %208 = arith.mulf %203, %207 : vector<8x8xf32>
    %cst_65 = arith.constant dense<0.000000e+00> : vector<8x8xf32>
    %209 = tpu.matmul %208, %195, %cst_65 {dimension_numbers = #tpu.dot_dimension_numbers<[1], [0], [0], [1], [0, 0, 1, 1], [], []>} : vector<8x8xf32>, vector<8x8xf32>, vector<8x8xf32> -> vector<8x8xf32>
    %210 = vector.extract_strided_slice %70 {offsets = [16, 0], sizes = [8, 32], strides = [1, 1]} : vector<32x32xf32> to vector<8x32xf32>
    %cst_66 = arith.constant dense<0.000000e+00> : vector<8x32xf32>
    %211 = tpu.matmul %209, %210, %cst_66 {dimension_numbers = #tpu.dot_dimension_numbers<[1], [0], [0], [1], [0, 0, 1, 1], [], []>} : vector<8x8xf32>, vector<8x32xf32>, vector<8x32xf32> -> vector<8x32xf32>
    %212 = arith.addf %192, %211 : vector<8x32xf32>
    %213 = vector.extract_strided_slice %61 {offsets = [8, 24], sizes = [8, 8], strides = [1, 1]} : vector<16x32xf32> to vector<8x8xf32>
    %214 = vector.extract_strided_slice %69 {offsets = [8, 24], sizes = [8, 8], strides = [1, 1]} : vector<16x32xf32> to vector<8x8xf32>
    %215 = vector.extract_strided_slice %32 {offsets = [8, 24], sizes = [8, 8], strides = [1, 1]} : vector<16x32xf32> to vector<8x8xf32>
    %216 = tpu.transpose %214, [1, 0] : vector<8x8xf32> -> vector<8x8xf32>
    %cst_67 = arith.constant dense<0.000000e+00> : vector<8x8xf32>
    %217 = tpu.matmul %213, %216, %cst_67 {dimension_numbers = #tpu.dot_dimension_numbers<[1], [0], [0], [1], [0, 0, 1, 1], [], []>} : vector<8x8xf32>, vector<8x8xf32>, vector<8x8xf32> -> vector<8x8xf32>
    %218 = arith.addf %217, %1 : vector<8x8xf32>
    %cst_68 = arith.constant dense<0xFF800000> : vector<8xf32>
    %219 = vector.multi_reduction <maximumf>, %218, %cst_68 [1] : vector<8x8xf32> to vector<8xf32>
    %220 = vector.shape_cast %219 : vector<8xf32> to vector<8x1xf32>
    %221 = vector.broadcast %220 : vector<8x1xf32> to vector<8x8xf32>
    %222 = arith.subf %218, %221 : vector<8x8xf32>
    %223 = math.exp %222 : vector<8x8xf32>
    %cst_69 = arith.constant dense<0.000000e+00> : vector<8xf32>
    %224 = vector.multi_reduction <add>, %223, %cst_69 [1] : vector<8x8xf32> to vector<8xf32>
    %225 = vector.shape_cast %224 : vector<8xf32> to vector<8x1xf32>
    %226 = tpu.reciprocal %225 : vector<8x1xf32> -> vector<8x1xf32>
    %227 = vector.broadcast %226 : vector<8x1xf32> to vector<8x8xf32>
    %228 = arith.mulf %223, %227 : vector<8x8xf32>
    %cst_70 = arith.constant dense<0.000000e+00> : vector<8x8xf32>
    %229 = tpu.matmul %228, %215, %cst_70 {dimension_numbers = #tpu.dot_dimension_numbers<[1], [0], [0], [1], [0, 0, 1, 1], [], []>} : vector<8x8xf32>, vector<8x8xf32>, vector<8x8xf32> -> vector<8x8xf32>
    %230 = vector.extract_strided_slice %70 {offsets = [24, 0], sizes = [8, 32], strides = [1, 1]} : vector<32x32xf32> to vector<8x32xf32>
    %cst_71 = arith.constant dense<0.000000e+00> : vector<8x32xf32>
    %231 = tpu.matmul %229, %230, %cst_71 {dimension_numbers = #tpu.dot_dimension_numbers<[1], [0], [0], [1], [0, 0, 1, 1], [], []>} : vector<8x8xf32>, vector<8x32xf32>, vector<8x32xf32> -> vector<8x32xf32>
    %232 = arith.addf %212, %231 : vector<8x32xf32>
    %233 = tpu.concatenate %151, %232 in 0 : vector<8x32xf32>, vector<8x32xf32> -> vector<16x32xf32>
    %c0_72 = arith.constant 0 : index
    %c0_73 = arith.constant 0 : index
    %234 = vector.load %arg7[%c0_72, %c0_73] : memref<1x32xf32, #tpu.memory_space<vmem>>, vector<1x32xf32>
    %235 = vector.broadcast %234 : vector<1x32xf32> to vector<16x32xf32>
    %236 = arith.addf %233, %235 : vector<16x32xf32>
    %237 = arith.addf %236, %0 : vector<16x32xf32>
    %c0_74 = arith.constant 0 : index
    %c0_75 = arith.constant 0 : index
    %238 = vector.load %arg14[%c0_74, %c0_75] : memref<1x32xf32, #tpu.memory_space<vmem>>, vector<1x32xf32>
    %c0_76 = arith.constant 0 : index
    %c0_77 = arith.constant 0 : index
    %239 = vector.load %arg15[%c0_76, %c0_77] : memref<1x32xf32, #tpu.memory_space<vmem>>, vector<1x32xf32>
    %cst_78 = arith.constant dense<0.000000e+00> : vector<16xf32>
    %240 = vector.multi_reduction <add>, %237, %cst_78 [1] : vector<16x32xf32> to vector<16xf32>
    %241 = vector.shape_cast %240 : vector<16xf32> to vector<16x1xf32>
    %cst_79 = arith.constant 3.200000e+01 : f32
    %242 = vector.broadcast %cst_79 : f32 to vector<16x1xf32>
    %243 = arith.divf %241, %242 : vector<16x1xf32>
    %244 = vector.broadcast %243 : vector<16x1xf32> to vector<16x32xf32>
    %245 = arith.subf %237, %244 : vector<16x32xf32>
    %246 = arith.mulf %245, %245 : vector<16x32xf32>
    %cst_80 = arith.constant dense<0.000000e+00> : vector<16xf32>
    %247 = vector.multi_reduction <add>, %246, %cst_80 [1] : vector<16x32xf32> to vector<16xf32>
    %248 = vector.shape_cast %247 : vector<16xf32> to vector<16x1xf32>
    %cst_81 = arith.constant 3.200000e+01 : f32
    %249 = vector.broadcast %cst_81 : f32 to vector<16x1xf32>
    %250 = arith.divf %248, %249 : vector<16x1xf32>
    %251 = vector.broadcast %243 : vector<16x1xf32> to vector<16x32xf32>
    %252 = arith.subf %237, %251 : vector<16x32xf32>
    %cst_82 = arith.constant 9.99999974E-6 : f32
    %253 = vector.broadcast %cst_82 : f32 to vector<16x1xf32>
    %254 = arith.addf %250, %253 : vector<16x1xf32>
    %255 = math.rsqrt %254 : vector<16x1xf32>
    %256 = vector.broadcast %255 : vector<16x1xf32> to vector<16x32xf32>
    %257 = arith.mulf %252, %256 : vector<16x32xf32>
    %258 = vector.broadcast %238 : vector<1x32xf32> to vector<16x32xf32>
    %259 = arith.mulf %257, %258 : vector<16x32xf32>
    %260 = vector.broadcast %239 : vector<1x32xf32> to vector<16x32xf32>
    %261 = arith.addf %259, %260 : vector<16x32xf32>
    %c0_83 = arith.constant 0 : index
    %c0_84 = arith.constant 0 : index
    %262 = vector.load %arg8[%c0_83, %c0_84] : memref<32x128xf32, #tpu.memory_space<vmem>>, vector<32x128xf32>
    %cst_85 = arith.constant dense<0.000000e+00> : vector<16x128xf32>
    %263 = tpu.matmul %261, %262, %cst_85 {dimension_numbers = #tpu.dot_dimension_numbers<[1], [0], [0], [1], [0, 0, 1, 1], [], []>} : vector<16x32xf32>, vector<32x128xf32>, vector<16x128xf32> -> vector<16x128xf32>
    %c0_86 = arith.constant 0 : index
    %c0_87 = arith.constant 0 : index
    %264 = vector.load %arg9[%c0_86, %c0_87] : memref<1x128xf32, #tpu.memory_space<vmem>>, vector<1x128xf32>
    %265 = vector.broadcast %264 : vector<1x128xf32> to vector<16x128xf32>
    %266 = arith.addf %263, %265 : vector<16x128xf32>
    %267 = vector.extract_strided_slice %266 {offsets = [0, 0], sizes = [16, 64], strides = [1, 1]} : vector<16x128xf32> to vector<16x64xf32>
    %268 = arith.negf %267 : vector<16x64xf32>
    %269 = math.exp %268 : vector<16x64xf32>
    %cst_88 = arith.constant 1.000000e+00 : f32
    %270 = vector.broadcast %cst_88 : f32 to vector<16x64xf32>
    %271 = arith.addf %270, %269 : vector<16x64xf32>
    %272 = arith.divf %270, %271 : vector<16x64xf32>
    %273 = vector.extract_strided_slice %266 {offsets = [0, 64], sizes = [16, 64], strides = [1, 1]} : vector<16x128xf32> to vector<16x64xf32>
    %cst_89 = arith.constant 0.000000e+00 : f32
    %274 = vector.broadcast %cst_89 : f32 to vector<16x64xf32>
    %275 = arith.maximumf %273, %274 : vector<16x64xf32>
    %276 = arith.mulf %272, %275 : vector<16x64xf32>
    %c0_90 = arith.constant 0 : index
    %c0_91 = arith.constant 0 : index
    %277 = vector.load %arg10[%c0_90, %c0_91] : memref<64x32xf32, #tpu.memory_space<vmem>>, vector<64x32xf32>
    %cst_92 = arith.constant dense<0.000000e+00> : vector<16x32xf32>
    %278 = tpu.matmul %276, %277, %cst_92 {dimension_numbers = #tpu.dot_dimension_numbers<[1], [0], [0], [1], [0, 0, 1, 1], [], []>} : vector<16x64xf32>, vector<64x32xf32>, vector<16x32xf32> -> vector<16x32xf32>
    %c0_93 = arith.constant 0 : index
    %c0_94 = arith.constant 0 : index
    %279 = vector.load %arg11[%c0_93, %c0_94] : memref<1x32xf32, #tpu.memory_space<vmem>>, vector<1x32xf32>
    %280 = vector.broadcast %279 : vector<1x32xf32> to vector<16x32xf32>
    %281 = arith.addf %278, %280 : vector<16x32xf32>
    %282 = arith.addf %281, %237 : vector<16x32xf32>
    %c0_95 = arith.constant 0 : index
    %c0_96 = arith.constant 0 : index
    %283 = vector.load %arg16[%c0_95, %c0_96] : memref<16x32xf32, #tpu.memory_space<vmem>>, vector<16x32xf32>
    tpu.vector_store %arg16[%c0_95, %c0_96], %282 {strides = array<i32>} : memref<16x32xf32, #tpu.memory_space<vmem>>, vector<16x32xf32>,
    return
  }
  func.func @transform_0(%arg0: i32) -> (i32, i32) {
    %c0_i32 = arith.constant 0 : i32
    %c0_i32_0 = arith.constant 0 : i32
    return %arg0, %c0_i32 : i32, i32
  }
  func.func @transform_1(%arg0: i32) -> (i32, i32) {
    %c0_i32 = arith.constant 0 : i32
    %c0_i32_0 = arith.constant 0 : i32
    %c0_i32_1 = arith.constant 0 : i32
    return %c0_i32, %c0_i32_0 : i32, i32
  }
  func.func @transform_2(%arg0: i32) -> (i32, i32) {
    %c0_i32 = arith.constant 0 : i32
    %c0_i32_0 = arith.constant 0 : i32
    %c0_i32_1 = arith.constant 0 : i32
    return %c0_i32, %c0_i32_0 : i32, i32
  }
  func.func @transform_3(%arg0: i32) -> (i32, i32) {
    %c0_i32 = arith.constant 0 : i32
    %c0_i32_0 = arith.constant 0 : i32
    %c0_i32_1 = arith.constant 0 : i32
    return %c0_i32, %c0_i32_0 : i32, i32
  }
  func.func @transform_4(%arg0: i32) -> (i32, i32) {
    %c0_i32 = arith.constant 0 : i32
    %c0_i32_0 = arith.constant 0 : i32
    %c0_i32_1 = arith.constant 0 : i32
    return %c0_i32, %c0_i32_0 : i32, i32
  }
  func.func @transform_5(%arg0: i32) -> (i32, i32) {
    %c0_i32 = arith.constant 0 : i32
    %c0_i32_0 = arith.constant 0 : i32
    %c0_i32_1 = arith.constant 0 : i32
    return %c0_i32, %c0_i32_0 : i32, i32
  }
  func.func @transform_6(%arg0: i32) -> (i32, i32) {
    %c0_i32 = arith.constant 0 : i32
    %c0_i32_0 = arith.constant 0 : i32
    %c0_i32_1 = arith.constant 0 : i32
    return %c0_i32, %c0_i32_0 : i32, i32
  }
  func.func @transform_7(%arg0: i32) -> (i32, i32) {
    %c0_i32 = arith.constant 0 : i32
    %c0_i32_0 = arith.constant 0 : i32
    %c0_i32_1 = arith.constant 0 : i32
    return %c0_i32, %c0_i32_0 : i32, i32
  }
  func.func @transform_8(%arg0: i32) -> (i32, i32) {
    %c0_i32 = arith.constant 0 : i32
    %c0_i32_0 = arith.constant 0 : i32
    %c0_i32_1 = arith.constant 0 : i32
    return %c0_i32, %c0_i32_0 : i32, i32
  }
  func.func @transform_9(%arg0: i32) -> (i32, i32) {
    %c0_i32 = arith.constant 0 : i32
    %c0_i32_0 = arith.constant 0 : i32
    %c0_i32_1 = arith.constant 0 : i32
    return %c0_i32, %c0_i32_0 : i32, i32
  }
  func.func @transform_10(%arg0: i32) -> (i32, i32) {
    %c0_i32 = arith.constant 0 : i32
    %c0_i32_0 = arith.constant 0 : i32
    %c0_i32_1 = arith.constant 0 : i32
    return %c0_i32, %c0_i32_0 : i32, i32
  }
  func.func @transform_11(%arg0: i32) -> (i32, i32) {
    %c0_i32 = arith.constant 0 : i32
    %c0_i32_0 = arith.constant 0 : i32
    %c0_i32_1 = arith.constant 0 : i32
    return %c0_i32, %c0_i32_0 : i32, i32
  }
  func.func @transform_12(%arg0: i32) -> (i32, i32) {
    %c0_i32 = arith.constant 0 : i32
    %c0_i32_0 = arith.constant 0 : i32
    %c0_i32_1 = arith.constant 0 : i32
    return %c0_i32, %c0_i32_0 : i32, i32
  }
  func.func @transform_13(%arg0: i32) -> (i32, i32) {
    %c0_i32 = arith.constant 0 : i32
    %c0_i32_0 = arith.constant 0 : i32
    %c0_i32_1 = arith.constant 0 : i32
    return %c0_i32, %c0_i32_0 : i32, i32
  }
  func.func @transform_14(%arg0: i32) -> (i32, i32) {
    %c0_i32 = arith.constant 0 : i32
    %c0_i32_0 = arith.constant 0 : i32
    %c0_i32_1 = arith.constant 0 : i32
    return %c0_i32, %c0_i32_0 : i32, i32
  }
  func.func @transform_15(%arg0: i32) -> (i32, i32) {
    %c0_i32 = arith.constant 0 : i32
    %c0_i32_0 = arith.constant 0 : i32
    return %arg0, %c0_i32 : i32, i32
  }
}

</mosaic_0001>

<bundles_post_ra>
// kernel: tpu_custom_call.1
= control target key start
LH: loop header
LB: loop body
LE: loop exit
PB: predicated region body
PF: predicated region fallthrough
CT: control target
= control target key end

     0   :  { %20 = vsyncpa [#allocation3], 0  ;;  %s3535_s0 = inlined_call_operand.hbm [shape: f32[16,32], index: 0, kind: input, shape index: {}]   ;;  %s3536_s1 = inlined_call_operand.hbm [shape: f32[8,8], index: 1, kind: input, shape index: {}]   ;;  %s3537_s2 = inlined_call_operand.hbm [shape: f32[16,32], index: 2, kind: input, shape index: {}]   ;;  %s3538_s3 = inlined_call_operand.hbm [shape: f32[16,32], index: 3, kind: input, shape index: {}]   ;;  %s3539_s4 = inlined_call_operand.vmem [shape: f32[32,96], index: 4, kind: input, shape index: {}]   ;;  %s3540_s5 = inlined_call_operand.vmem [shape: f32[32,32], index: 5, kind: input, shape index: {}]   ;;  %s3541_s6 = inlined_call_operand.vmem [shape: f32[1,32], index: 6, kind: input, shape index: {}]   ;;  %s3542_s7 = inlined_call_operand.vmem [shape: f32[32,128], index: 7, kind: input, shape index: {}]   ;;  %s3543_s8 = inlined_call_operand.vmem [shape: f32[1,128], index: 8, kind: input, shape index: {}]   ;;  %s3544_s9 = inlined_call_operand.vmem [shape: f32[64,32], index: 9, kind: input, shape index: {}]   ;;  %s3545_s10 = inlined_call_operand.vmem [shape: f32[1,32], index: 10, kind: input, shape index: {}]   ;;  %s3546_s11 = inlined_call_operand.vmem [shape: f32[1,32], index: 11, kind: input, shape index: {}]   ;;  %s3547_s12 = inlined_call_operand.vmem [shape: f32[1,32], index: 12, kind: input, shape index: {}]   ;;  %s3548_s13 = inlined_call_operand.vmem [shape: f32[1,32], index: 13, kind: input, shape index: {}]   ;;  %s3549_s14 = inlined_call_operand.vmem [shape: f32[1,32], index: 14, kind: input, shape index: {}]   ;;  %s3550_s15 = inlined_call_operand.hbm [shape: f32[16,32], index: 15, kind: output, shape index: {}]  }
   0x1   :  { %21 = vsyncpa [#allocation6], 0 }
   0x2   :  { %22 = vsyncpa [#allocation9], 0 }
   0x3   :  { %23 = vsyncpa [#allocation4], 0  ;;  %s3021_s18 = smov [#allocation5]   ;;  %s3022_s20 = smov [#allocation2]  }
   0x4   :  { %s42_s19 = sshll.u32 %s3021_s18, 4  ;;  %s29_s21 = sshll.u32 %s3022_s20, 4  ;;  %s43_s19 = int_to_ptr.vmem [resolvable:$true] %s42_s19  ;;  %s30_s21 = int_to_ptr.vmem [resolvable:$true] %s29_s21 }
   0x5   :  { %s2921_s22 = scalar_lea.vmem %s43_s19, 128  ;;  %p2926_p1 = scmp.lt.s32.totalorder %s43_s19, %s43_s19 }
   0x6   :  { %p2922_p0 = scmp.ne.s32.totalorder %s43_s19, %s2921_s22  ;;  %p2927_p2 = scmp.lt.s32.totalorder %s2921_s22, %s2921_s22 }
   0x8   :  { %p2928_p3 = por %p2927_p2, %p2926_p1 }
   0xa   :  { %p2929_p4 = pnand %p2928_p3, %p2922_p0 }
   0xc   :  { %2932 = shalt.err (!%p2929_p4)
}
   0xd   :  { %45 = dma.hbm_to_vmem [thread:$0]  %s3536_s1, 128, %s43_s19, [#allocation6]  }
   0xe   :  { %s2941_s25 = scalar_lea.vmem %s30_s21, 256  ;;  %p2946_p6 = scmp.lt.s32.totalorder %s30_s21, %s30_s21 }
   0xf   :  { %p2942_p5 = scmp.ne.s32.totalorder %s30_s21, %s2941_s25  ;;  %p2947_p7 = scmp.lt.s32.totalorder %s2941_s25, %s2941_s25 }
  0x11   :  { %p2948_p8 = por %p2947_p7, %p2946_p6 }
  0x13   :  { %p2949_p9 = pnand %p2948_p8, %p2942_p5 }
  0x15   :  { %2952 = shalt.err (!%p2949_p9)
}
  0x16   :  { %s3023_s26 = smov 128   ;;  %s3024_s27 = smov 8  }
  0x17   :  { %35 = dma.hbm_to_vmem [thread:$0]  %s3535_s0, 256, %s30_s21, [#allocation3], %s3023_s26, %s3023_s26, %s3024_s27  }
  0x18   :  { %s3025_s30 = smov [#allocation7]   ;;  %s3026_s17 = smov [#allocation8]  }
  0x19   :  { %s51_s16 = sshll.u32 %s3025_s30, 4  ;;  %s63_s1 = sshll.u32 %s3026_s17, 4  ;;  %s52_s16 = int_to_ptr.vmem [resolvable:$true] %s51_s16  ;;  %s64_s1 = int_to_ptr.vmem [resolvable:$true] %s63_s1 }
  0x1a   :  { %s2961_s18 = scalar_lea.vmem %s52_s16, 256  ;;  %p2966_p11 = scmp.lt.s32.totalorder %s52_s16, %s52_s16 }
  0x1b   :  { %p2962_p10 = scmp.ne.s32.totalorder %s52_s16, %s2961_s18  ;;  %p2967_p12 = scmp.lt.s32.totalorder %s2961_s18, %s2961_s18 }
  0x1d   :  { %p2968_p13 = por %p2967_p12, %p2966_p11 }
  0x1f   :  { %p2969_p0 = pnand %p2968_p13, %p2962_p10 }
  0x21   :  { %2972 = shalt.err (!%p2969_p0)
}
  0x22   :  { %57 = dma.hbm_to_vmem [thread:$0]  %s3537_s2, 256, %s52_s16, [#allocation6], %s3023_s26, %s3023_s26, %s3024_s27  }
  0x23   :  { %s2981_s0 = scalar_lea.vmem %s64_s1, 256  ;;  %p2986_p2 = scmp.lt.s32.totalorder %s64_s1, %s64_s1 }
  0x24   :  { %p2982_p1 = scmp.ne.s32.totalorder %s64_s1, %s2981_s0  ;;  %p2987_p3 = scmp.lt.s32.totalorder %s2981_s0, %s2981_s0 }
  0x26   :  { %p2988_p4 = por %p2987_p3, %p2986_p2 }
  0x28   :  { %p2989_p5 = pnand %p2988_p4, %p2982_p1 }
  0x2a   :  { %2992 = shalt.err (!%p2989_p5)
}
  0x2b   :  { %69 = dma.hbm_to_vmem [thread:$0]  %s3538_s3, 256, %s64_s1, [#allocation9], %s3023_s26, %s3023_s26, %s3024_s27  }
  0x2c   :  { %3013 = dma.done.wait [#allocation3], 256  }
  0x2d   :  { %3014 = vsyncadd [#allocation3], 4294967040 }
  0x2e   :  { %3015 = dma.done.wait [#allocation6], 384  }
  0x2f   :  { %3016 = vsyncadd [#allocation6], 4294966912 }
  0x30   :  { %3017 = dma.done.wait [#allocation9], 256  }
  0x31   :  { %3018 = vsyncadd [#allocation9], 4294967040  ;;  %vm113_vm0 = vcmask 261120   ;;  %v3145_v0 = vld [vmem:[#allocation2] sm:$0xff]  ;;  %v3147_v1 = vld [vmem:[#allocation2 + $0x8] sm:$0xff]  ;;  %vm257_vm1 = vcmask 1047808   ;;  %v242_v45 = vlaneseq }
  0x32   :  { %v114_v2 = vsel %vm113_vm0, %v3145_v0, 0.0  ;;  %v117_v3 = vsel %vm113_vm0, %v3147_v1, 0.0  ;;  %v160_v14 = vld [vmem:[%s3539_s4 + $0x18] sm:$0xff]  ;;  %v159_v15 = vld [vmem:[%s3539_s4 + $0x10] sm:$0xff]  ;;  %v158_v16 = vld [vmem:[%s3539_s4 + $0x8] sm:$0xff]  ;;  %s3030_s19 = smov 127  }
  0x33   :  { %115 = vadd.xlane.f32.xlu0 %v114_v2  ;;  %2681 = vmatprep.subr.mxu0 %v160_v14  ;;  %v157_v17 = vld [vmem:[%s3539_s4] sm:$0xff]  ;;  %s3027_s4 = smov 96   ;;  %v107_v43 = vld [vmem:[#allocation7] sm:$0xff]  ;;  %v243_v46 = vand.u32 127, %v242_v45  ;;  %v109_v49 = vld [vmem:[#allocation8] sm:$0xff]  ;;  %v3031_v54 = vmov 0.0  }
  0x34   :  { %2682 = vmatpush3.msra.mxu0 %v160_v14  ;;  %v2564_v25 = vld [vmem:[%s3546_s11] ss:$0 sm:$0xff]  ;;  %s3028_s11 = smov 32   ;;  %2697 = vmatprep.subr.mxu1 %v3031_v54  ;;  %vm3032_vm3 = vmmov 0   ;;  %s3033_s20 = smov 88   ;;  %vm367_vm4 = vcmask 64512  }
  0x35   :  { %2683 = vmatprep.subr.mxu0 %v159_v15  ;;  %v2565_v27 = vld [vmem:[%s3547_s12] ss:$0 sm:$0xff]  ;;  %s3029_s12 = smov 97   ;;  %v248_v47 = vand.u32 1, %v243_v46  ;;  %2699 = vmatprep.mubr.msk.f32.mxu1 %vm3032_vm3, %v3031_v54  ;;  %s3034_s0 = smov 120   ;;  %vm2459_vm5 = vcmask 523264  }
  0x36   :  { %2684 = vmatpush3.msra.mxu0 %v159_v15  ;;  %s3035_s21 = smov 56   ;;  %s3036_s22 = smov 80  }
  0x37   :  { %118 = vadd.xlane.f32.xlu0 %v117_v3  ;;  %2685 = vmatprep.subr.mxu0 %v158_v16  ;;  %vm3195_vm2 = vcmp.eq.s32.totalorder %v248_v47, 0  ;;  %s3037_s2 = smov 112   ;;  %s3038_s3 = smov 64  }
  0x38   :  { %2686 = vmatpush3.msra.mxu0 %v158_v16  ;;  %s3039_s29 = smov 48   ;;  %s3040_s30 = smov 104  }
  0x39   :  { %2687 = vmatprep.subr.mxu0 %v157_v17  ;;  %s3041_s16 = smov 72   ;;  %s3042_s18 = smov 40  }
  0x3a   :  { %2688 = vmatpush3.msra.mxu0 %v157_v17 }
  0x3b   :  { %2692 = vmatprep.subr.mxu0 %v3031_v54 }
  0xbc   :  { %v116_v4 = vpop.xlane.xlu0 %115 }
  0xbd   :  { %v121_v5 = vmul.f32 0.03125, %v116_v4 }
  0xbf   :  { %v123_v6 = vsub.f32 %v3145_v0, %v121_v5 }
  0xc0   :  { %v119_v7 = vpop.xlane.xlu0 %118 }
  0xc1   :  { %v122_v8 = vmul.f32 0.03125, %v119_v7  ;;  %v125_v9 = vmul.f32 %v123_v6, %v123_v6 }
  0xc3   :  { %v124_v10 = vsub.f32 %v3147_v1, %v122_v8  ;;  %v127_v11 = vsel %vm113_vm0, %v125_v9, 0.0 }
  0xc4   :  { %128 = vadd.xlane.f32.xlu1 %v127_v11 }
  0xc5   :  { %v126_v12 = vmul.f32 %v124_v10, %v124_v10 }
  0xc7   :  { %v130_v13 = vsel %vm113_vm0, %v126_v12, 0.0 }
  0xc8   :  { %131 = vadd.xlane.f32.xlu1 %v130_v13 }
 0x14d   :  { %v129_v18 = vpop.xlane.xlu1 %128 }
 0x14e   :  { %v133_v19 = vmul.f32 0.03125, %v129_v18 }
 0x150   :  { %v135_v20 = vadd.f32 1e-05, %v133_v19 }
 0x151   :  { %v132_v21 = vpop.xlane.xlu1 %131 }
 0x152   :  { %2865 = vrsqrt.f32 %v135_v20  ;;  %v134_v22 = vmul.f32 0.03125, %v132_v21 }
 0x154   :  { %v136_v23 = vadd.f32 1e-05, %v134_v22 }
 0x156   :  { %2867 = vrsqrt.f32 %v136_v23 }
 0x15f   :  { %v2866_v24 = vpop.eup %2865 }
 0x160   :  { %v139_v26 = vmul.f32 %v2866_v24, %v123_v6 }
 0x162   :  { %v147_v28 = vmul.f32 %v2564_v25, %v139_v26 }
 0x163   :  { %v2868_v29 = vpop.eup %2867 }
 0x164   :  { %v140_v30 = vmul.f32 %v2868_v29, %v124_v10  ;;  %v155_v31 = vadd.f32 %v2565_v27, %v147_v28  ;;  %v3237_v10 = vld [vmem:[#allocation5] sm:$0xff] }
 0x166   :  { %v148_v32 = vmul.f32 %v2564_v25, %v140_v30  ;;  %2689 = vmatprep.mubr.msk.f32.mxu0 %vm113_vm0, %v155_v31 }
 0x168   :  { %v156_v33 = vadd.f32 %v2565_v27, %v148_v32 }
 0x16a   :  { %2690 = vmatmul.mubr.msk.f32.vlgmr.msra.gmra.mxu0 %vm113_vm0, %v156_v33 }
 0x16b   :  { %2694 = vmatprep.mubr.msk.f32.mxu0 %vm3032_vm3, %v3031_v54 }
 0x22a   :  { %v3177_v34 = vpop.f32.mrf.mxu0 }
 0x22c   :  { %v3179_v35 = vpop.f32.mrf.mxu0 }
 0x22d   :  { %300 = vrot.lane.b32.xlu0 %v3179_v35, %s3027_s4  ;;  %v290_v3 = vmul.f32 %v3179_v35, %v107_v43 }
 0x29f   :  { %v301_v36 = vpop.permute.xlu0 %300 }
 0x2a0   :  { %306 = vrot.lane.b32.xlu1 %v301_v36, %s3028_s11 }
 0x312   :  { %v307_v37 = vpop.permute.xlu1 %306 }
 0x313   :  { %v308_v38 = vsel %vm257_vm1, %v307_v37, %v301_v36 }
 0x314   :  { %312 = vrot.lane.b32.xlu1 %v308_v38, %s3028_s11 }
 0x318   :  { %258 = vrot.lane.b32.xlu1 %v3179_v35, %s3028_s11 }
 0x386   :  { %v313_v39 = vpop.permute.xlu1 %312 }
 0x387   :  { %v316_v40 = vsel %vm257_vm1, %v313_v39, %v301_v36  ;;  %v3264_v39 = vld [vmem:[%s3540_s5] sm:$0xff] }
 0x388   :  { %330 = vrot.lane.b32.xlu1 %v316_v40, %s3029_s12  ;;  %v318_v41 = vsub.f32 0.0, %v316_v40  ;;  %v3270_v40 = vld [vmem:[%s3540_s5 + $0x8] sm:$0xff] }
 0x38a   :  { %322 = vrot.lane.b32.xlu0 %v318_v41, %s3030_s19  ;;  %v259_v42 = vpop.permute.xlu1 %258 }
 0x38b   :  { %v260_v44 = vsel %vm257_vm1, %v259_v42, %v3179_v35 }
 0x38c   :  { %340 = vrot.lane.b32.xlu1 %v107_v43, %s3028_s11 }
 0x38e   :  { %264 = vrot.lane.b32.xlu0 %v260_v44, %s3028_s11 }
 0x3fa   :  { %v331_v50 = vpop.permute.xlu1 %330 }
 0x3fc   :  { %v323_v51 = vpop.permute.xlu0 %322 }
 0x3fd   :  { %v336_v52 = vsel %vm3195_vm2, %v323_v51, %v331_v50 }
 0x3fe   :  { %v348_v53 = vmul.f32 %v336_v52, %v109_v49  ;;  %v341_v58 = vpop.permute.xlu1 %340 }
 0x3ff   :  { %v346_v59 = vmul.f32 %v341_v58, %v3179_v35 }
 0x400   :  { %v265_v55 = vpop.permute.xlu0 %264  ;;  %352 = vrot.lane.b32.xlu0 %v348_v53, %s3028_s11 }
 0x401   :  { %v268_v56 = vsel %vm257_vm1, %v265_v55, %v3179_v35 }
 0x402   :  { %v270_v57 = vsub.f32 0.0, %v268_v56 }
 0x404   :  { %274 = vrot.lane.b32.xlu1 %v270_v57, %s3030_s19  ;;  %282 = vrot.lane.b32.xlu0 %v268_v56, %s3029_s12 }
 0x472   :  { %v353_v60 = vpop.permute.xlu0 %352 }
 0x473   :  { %v3213_v61 = vadd.f32 %v353_v60, %v346_v59 }
 0x475   :  { %532 = vrot.lane.b32.xlu0 %v3213_v61, %s3033_s20  ;;  %365 = vrot.lane.b32.xlu1 %v3213_v61, %s3027_s4 }
 0x476   :  { %v283_v62 = vpop.permute.xlu0 %282  ;;  %v275_v63 = vpop.permute.xlu1 %274 }
 0x477   :  { %v288_v2 = vsel %vm3195_vm2, %v275_v63, %v283_v62 }
 0x478   :  { %v292_v4 = vmul.f32 %v288_v2, %v109_v49 }
 0x47a   :  { %v294_v5 = vadd.f32 %v292_v4, %v290_v3 }
 0x47c   :  { %v3222_v6 = vmul.f32 0.35355338, %v294_v5 }
 0x47e   :  { %530 = vrot.lane.b32.xlu1 %v3222_v6, %s3034_s0 }
 0x4e7   :  { %v366_v7 = vpop.permute.xlu1 %365  ;;  %v533_v8 = vpop.permute.xlu0 %532 }
 0x4e8   :  { %2693 = vmatpush3.xpose.msk.msra.mxu0 %vm367_vm4, %v366_v7 }
 0x4e9   :  { %2702 = vmatprep.subr.mxu0 %v3031_v54 }
 0x4eb   :  { %2695 = vmatmul.mubr.msk.f32.vlgmr.msra.gmra.mxu0 %vm367_vm4, %v3222_v6 }
 0x4ec   :  { %2703 = vmatpush3.xpose.msk.msra.mxu0 %vm367_vm4, %v533_v8  ;;  %2704 = vmatprep.mubr.msk.f32.mxu0 %vm3032_vm3, %v3031_v54  ;;  %v3314_v8 = vld [vmem:[%s3540_s5 + $0x10] sm:$0xff] }
 0x4ed   :  { %2712 = vmatprep.subr.mxu0 %v3031_v54 }
 0x4f0   :  { %v531_v9 = vpop.permute.xlu1 %530 }
 0x4f1   :  { %2705 = vmatmul.mubr.msk.f32.vlgmr.msra.gmra.mxu0 %vm367_vm4, %v531_v9 }
 0x4f2   :  { %2714 = vmatprep.mubr.msk.f32.mxu0 %vm3032_vm3, %v3031_v54  ;;  %2713 = vmatpush3.msra.mxu0 %v3270_v40 }
 0x4f3   :  { %2722 = vmatprep.subr.mxu0 %v3031_v54 }
 0x5ab   :  { %v439_v11 = vpop.f32.mrf.mxu0 }
 0x5ac   :  { %v440_v12 = vadd.f32 %v439_v11, %v3237_v10 }
 0x5ad   :  { %v2696_v13 = vpop.f32.mrf.mxu0 }
 0x5ae   :  { %v443_v14 = vsel %vm367_vm4, %v440_v12, -inf }
 0x5af   :  { %444 = vmax.xlane.f32.xlu0 %v443_v14 }
 0x5b1   :  { %v604_v15 = vpop.f32.mrf.mxu0 }
 0x5b2   :  { %v605_v16 = vadd.f32 %v604_v15, %v3237_v10 }
 0x5b3   :  { %v2706_v17 = vpop.f32.mrf.mxu0 }
 0x5b4   :  { %v608_v18 = vsel %vm367_vm4, %v605_v16, -inf }
 0x5b5   :  { %609 = vmax.xlane.f32.xlu1 %v608_v18 }
 0x5c6   :  { %619 = vrot.lane.b32.xlu1 %v3179_v35, %s3035_s21 }
 0x5ca   :  { %843 = vrot.lane.b32.xlu1 %v3213_v61, %s3036_s22 }
 0x5ce   :  { %841 = vrot.lane.b32.xlu1 %v3222_v6, %s3037_s2 }
 0x638   :  { %v445_v19 = vpop.xlane.xlu0 %444 }
 0x639   :  { %v446_v20 = vsub.f32 %v440_v12, %v445_v19 }
 0x63b   :  { %v447_v21 = vmul.f32 1.442695, %v446_v20 }
 0x63d   :  { %2869 = vpow2.f32 %v447_v21  ;;  %v108_v21 = vld [vmem:[#allocation7 + $0x8] sm:$0xff] }
 0x63e   :  { %v610_v22 = vpop.xlane.xlu1 %609 }
 0x63f   :  { %v611_v23 = vsub.f32 %v605_v16, %v610_v22 }
 0x641   :  { %v612_v24 = vmul.f32 1.442695, %v611_v23 }
 0x642   :  { %v620_v36 = vpop.permute.xlu1 %619 }
 0x643   :  { %2871 = vpow2.f32 %v612_v24  ;;  %v110_v24 = vld [vmem:[#allocation8 + $0x8] sm:$0xff] }
 0x646   :  { %v844_v43 = vpop.permute.xlu1 %843 }
 0x64a   :  { %v2870_v25 = vpop.eup %2869  ;;  %v842_v46 = vpop.permute.xlu1 %841 }
 0x64b   :  { %v449_v26 = vsel %vm367_vm4, %v2870_v25, 0.0 }
 0x64c   :  { %450 = vadd.xlane.f32.xlu0 %v449_v26 }
 0x650   :  { %v2872_v27 = vpop.eup %2871 }
 0x651   :  { %v614_v28 = vsel %vm367_vm4, %v2872_v27, 0.0 }
 0x652   :  { %615 = vadd.xlane.f32.xlu0 %v614_v28 }
 0x668   :  { %454 = vrot.lane.b32.xlu0 %v3179_v35, %s3038_s3 }
 0x6d5   :  { %v451_v29 = vpop.xlane.xlu0 %450 }
 0x6d6   :  { %2873 = vrcp.f32 %v451_v29 }
 0x6db   :  { %v616_v30 = vpop.xlane.xlu0 %615 }
 0x6dc   :  { %2875 = vrcp.f32 %v616_v30 }
 0x6df   :  { %v455_v31 = vpop.permute.xlu0 %454 }
 0x6e0   :  { %2698 = vmatpush3.msra.mxu1 %v455_v31 }
 0x6e1   :  { %2707 = vmatprep.subr.mxu1 %v3031_v54 }
 0x6e3   :  { %v2874_v32 = vpop.eup %2873 }
 0x6e4   :  { %v453_v33 = vmul.f32 %v2874_v32, %v2870_v25 }
 0x6e6   :  { %2700 = vmatmul.mubr.msk.f32.vlgmr.msra.gmra.mxu1 %vm367_vm4, %v453_v33 }
 0x6e7   :  { %2708 = vmatpush3.msra.mxu1 %v620_v36  ;;  %2709 = vmatprep.mubr.msk.f32.mxu1 %vm3032_vm3, %v3031_v54 }
 0x6e8   :  { %2717 = vmatprep.subr.mxu1 %v3031_v54 }
 0x6e9   :  { %v2876_v37 = vpop.eup %2875 }
 0x6ea   :  { %v618_v38 = vmul.f32 %v2876_v37, %v2872_v27 }
 0x6ec   :  { %2710 = vmatmul.mubr.msk.f32.vlgmr.msra.gmra.mxu1 %vm367_vm4, %v618_v38 }
 0x6ed   :  { %2719 = vmatprep.mubr.msk.f32.mxu1 %vm3032_vm3, %v3031_v54  ;;  %2718 = vmatpush3.msra.mxu1 %v3264_v39 }
 0x6ee   :  { %2727 = vmatprep.subr.mxu1 %v3031_v54 }
 0x7a6   :  { %v526_v41 = vpop.f32.mrf.mxu1 }
 0x7a7   :  { %2720 = vmatmul.mubr.msk.f32.vlgmr.msra.gmra.mxu1 %vm367_vm4, %v526_v41 }
 0x7a8   :  { %v2701_v42 = vpop.f32.mrf.mxu1  ;;  %2729 = vmatprep.mubr.msk.f32.mxu1 %vm3032_vm3, %v3031_v54 }
 0x7ac   :  { %v691_v44 = vpop.f32.mrf.mxu1 }
 0x7ad   :  { %2715 = vmatmul.mubr.msk.f32.vlgmr.msra.gmra.mxu0 %vm367_vm4, %v691_v44 }
 0x7ae   :  { %2723 = vmatpush3.xpose.msk.msra.mxu0 %vm367_vm4, %v844_v43  ;;  %v2711_v45 = vpop.f32.mrf.mxu1  ;;  %2724 = vmatprep.mubr.msk.f32.mxu0 %vm3032_vm3, %v3031_v54 }
 0x7af   :  { %2732 = vmatprep.subr.mxu0 %v3031_v54 }
 0x7b1   :  { %2725 = vmatmul.mubr.msk.f32.vlgmr.msra.gmra.mxu0 %vm367_vm4, %v842_v46 }
 0x7b2   :  { %2734 = vmatprep.mubr.msk.f32.mxu0 %vm3032_vm3, %v3031_v54  ;;  %2733 = vmatpush3.msra.mxu0 %v3314_v8 }
 0x7b3   :  { %2742 = vmatprep.subr.mxu0 %v3031_v54 }
 0x867   :  { %v837_v47 = vpop.f32.mrf.mxu1 }
 0x869   :  { %v2721_v49 = vpop.f32.mrf.mxu1 }
 0x86d   :  { %v764_v50 = vpop.f32.mrf.mxu0 }
 0x86e   :  { %v3286_v51 = vadd.f32 %v837_v47, %v764_v50 }
 0x86f   :  { %v2716_v52 = vpop.f32.mrf.mxu0 }
 0x870   :  { %v291_v52 = vmul.f32 %v3177_v34, %v108_v21 }
 0x871   :  { %v915_v53 = vpop.f32.mrf.mxu0 }
 0x872   :  { %v916_v55 = vadd.f32 %v915_v53, %v3237_v10 }
 0x873   :  { %v2726_v56 = vpop.f32.mrf.mxu0 }
 0x874   :  { %v919_v57 = vsel %vm367_vm4, %v916_v55, -inf }
 0x875   :  { %920 = vmax.xlane.f32.xlu0 %v919_v57 }
 0x88b   :  { %930 = vrot.lane.b32.xlu0 %v3179_v35, %s3039_s29 }
 0x88f   :  { %1080 = vrot.lane.b32.xlu0 %v3222_v6, %s3040_s30 }
 0x8fe   :  { %v921_v58 = vpop.xlane.xlu0 %920 }
 0x8ff   :  { %v922_v59 = vsub.f32 %v916_v55, %v921_v58 }
 0x901   :  { %v923_v60 = vmul.f32 1.442695, %v922_v59 }
 0x902   :  { %v931_v62 = vpop.permute.xlu0 %930 }
 0x903   :  { %2877 = vpow2.f32 %v923_v60  ;;  %2728 = vmatpush3.msra.mxu1 %v931_v62 }
 0x904   :  { %2737 = vmatprep.subr.mxu1 %v3031_v54 }
 0x910   :  { %v2878_v63 = vpop.eup %2877 }
 0x911   :  { %v925_v2 = vsel %vm367_vm4, %v2878_v63, 0.0 }
 0x912   :  { %926 = vadd.xlane.f32.xlu1 %v925_v2 }
 0x923   :  { %1082 = vrot.lane.b32.xlu1 %v3213_v61, %s3041_s16  ;;  %v1081_v61 = vpop.permute.xlu0 %1080 }
 0x927   :  { %302 = vrot.lane.b32.xlu1 %v3177_v34, %s3027_s4 }
 0x99b   :  { %v927_v3 = vpop.xlane.xlu1 %926 }
 0x99c   :  { %2879 = vrcp.f32 %v927_v3 }
 0x99f   :  { %v1083_v4 = vpop.permute.xlu1 %1082 }
 0x9a3   :  { %v303_v5 = vpop.permute.xlu1 %302 }
 0x9a4   :  { %309 = vrot.lane.b32.xlu0 %v303_v5, %s3028_s11 }
 0x9a8   :  { %261 = vrot.lane.b32.xlu0 %v3177_v34, %s3028_s11 }
 0x9a9   :  { %v2880_v6 = vpop.eup %2879 }
 0x9aa   :  { %v929_v7 = vmul.f32 %v2880_v6, %v2878_v63  ;;  %v3379_v63 = vld [vmem:[%s3540_s5 + $0x18] sm:$0xff] }
 0x9ac   :  { %2730 = vmatmul.mubr.msk.f32.vlgmr.msra.gmra.mxu1 %vm367_vm4, %v929_v7 }
 0x9ad   :  { %2738 = vmatpush3.xpose.msk.msra.mxu1 %vm367_vm4, %v1083_v4  ;;  %2739 = vmatprep.mubr.msk.f32.mxu1 %vm3032_vm3, %v3031_v54 }
 0x9ae   :  { %2747 = vmatprep.subr.mxu1 %v3031_v54 }
 0x9b0   :  { %2740 = vmatmul.mubr.msk.f32.vlgmr.msra.gmra.mxu1 %vm367_vm4, %v1081_v61 }
 0x9b1   :  { %2749 = vmatprep.mubr.msk.f32.mxu1 %vm3032_vm3, %v3031_v54  ;;  %2748 = vmatpush3.msra.mxu1 %v3379_v63 }
 0x9b2   :  { %2757 = vmatprep.subr.mxu1 %v3031_v54 }
 0xa16   :  { %v310_v9 = vpop.permute.xlu0 %309 }
 0xa17   :  { %v311_v11 = vsel %vm257_vm1, %v310_v9, %v303_v5 }
 0xa18   :  { %314 = vrot.lane.b32.xlu1 %v311_v11, %s3028_s11 }
 0xa1a   :  { %v262_v19 = vpop.permute.xlu0 %261 }
 0xa1b   :  { %v263_v20 = vsel %vm257_vm1, %v262_v19, %v3177_v34 }
 0xa6c   :  { %v1002_v12 = vpop.f32.mrf.mxu1 }
 0xa6d   :  { %2735 = vmatmul.mubr.msk.f32.vlgmr.msra.gmra.mxu0 %vm367_vm4, %v1002_v12 }
 0xa6e   :  { %v2731_v13 = vpop.f32.mrf.mxu1  ;;  %2744 = vmatprep.mubr.msk.f32.mxu0 %vm3032_vm3, %v3031_v54 }
 0xa70   :  { %v1154_v14 = vpop.f32.mrf.mxu1 }
 0xa71   :  { %v1155_v22 = vadd.f32 %v1154_v14, %v3237_v10 }
 0xa72   :  { %v2741_v15 = vpop.f32.mrf.mxu1 }
 0xa73   :  { %v1158_v23 = vsel %vm367_vm4, %v1155_v22, -inf }
 0xa8a   :  { %v315_v16 = vpop.permute.xlu1 %314 }
 0xa8b   :  { %v317_v17 = vsel %vm257_vm1, %v315_v16, %v303_v5 }
 0xa8c   :  { %332 = vrot.lane.b32.xlu0 %v317_v17, %s3029_s12  ;;  %v319_v18 = vsub.f32 0.0, %v317_v17 }
 0xa8e   :  { %324 = vrot.lane.b32.xlu1 %v319_v18, %s3030_s19 }
 0xa92   :  { %266 = vrot.lane.b32.xlu1 %v263_v20, %s3028_s11 }
 0xa96   :  { %342 = vrot.lane.b32.xlu1 %v108_v21, %s3028_s11 }
 0xaab   :  { %1159 = vmax.xlane.f32.xlu0 %v1158_v23 }
 0xac1   :  { %1169 = vrot.lane.b32.xlu0 %v3179_v35, %s3042_s18 }
 0xafe   :  { %v333_v25 = vpop.permute.xlu0 %332 }
 0xb00   :  { %v325_v26 = vpop.permute.xlu1 %324 }
 0xb01   :  { %v337_v27 = vsel %vm3195_vm2, %v325_v26, %v333_v25 }
 0xb02   :  { %v349_v28 = vmul.f32 %v337_v27, %v110_v24 }
 0xb04   :  { %v267_v29 = vpop.permute.xlu1 %266  ;;  %354 = vrot.lane.b32.xlu1 %v349_v28, %s3028_s11 }
 0xb05   :  { %v269_v30 = vsel %vm257_vm1, %v267_v29, %v3177_v34 }
 0xb06   :  { %v271_v31 = vsub.f32 0.0, %v269_v30 }
 0xb08   :  { %276 = vrot.lane.b32.xlu1 %v271_v31, %s3030_s19  ;;  %v343_v44 = vpop.permute.xlu1 %342 }
 0xb09   :  { %v347_v45 = vmul.f32 %v3177_v34, %v343_v44 }
 0xb0c   :  { %284 = vrot.lane.b32.xlu1 %v269_v30, %s3029_s12 }
 0xb2d   :  { %v1075_v32 = vpop.f32.mrf.mxu0 }
 0xb2e   :  { %v3342_v35 = vadd.f32 %v1075_v32, %v3286_v51 }
 0xb2f   :  { %v2736_v33 = vpop.f32.mrf.mxu0 }
 0xb34   :  { %v1160_v36 = vpop.xlane.xlu0 %1159 }
 0xb35   :  { %v1161_v37 = vsub.f32 %v1155_v22, %v1160_v36 }
 0xb37   :  { %v1162_v38 = vmul.f32 1.442695, %v1161_v37 }
 0xb38   :  { %v1170_v41 = vpop.permute.xlu0 %1169 }
 0xb39   :  { %2881 = vpow2.f32 %v1162_v38  ;;  %2743 = vmatpush3.msra.mxu0 %v1170_v41 }
 0xb3a   :  { %2752 = vmatprep.subr.mxu0 %v3031_v54 }
 0xb46   :  { %v2882_v42 = vpop.eup %2881 }
 0xb47   :  { %v1164_v43 = vsel %vm367_vm4, %v2882_v42, 0.0 }
 0xb48   :  { %1165 = vadd.xlane.f32.xlu1 %v1164_v43 }
 0xb76   :  { %v355_v46 = vpop.permute.xlu1 %354 }
 0xb77   :  { %v3347_v47 = vadd.f32 %v355_v46, %v347_v45 }
 0xb79   :  { %1320 = vrot.lane.b32.xlu0 %v3347_v47, %s3027_s4  ;;  %1486 = vrot.lane.b32.xlu1 %v3347_v47, %s3033_s20 }
 0xb7a   :  { %v277_v49 = vpop.permute.xlu1 %276 }
 0xb7e   :  { %v285_v50 = vpop.permute.xlu1 %284 }
 0xb7f   :  { %v289_v51 = vsel %vm3195_vm2, %v277_v49, %v285_v50 }
 0xb80   :  { %v293_v53 = vmul.f32 %v289_v51, %v110_v24 }
 0xb82   :  { %v295_v55 = vadd.f32 %v293_v53, %v291_v52 }
 0xb84   :  { %v3356_v56 = vmul.f32 0.35355338, %v295_v55 }
 0xb86   :  { %1484 = vrot.lane.b32.xlu0 %v3356_v56, %s3034_s0 }
 0xbd1   :  { %v1166_v57 = vpop.xlane.xlu1 %1165 }
 0xbd2   :  { %2883 = vrcp.f32 %v1166_v57 }
 0xbdf   :  { %v2884_v58 = vpop.eup %2883 }
 0xbe0   :  { %v1168_v59 = vmul.f32 %v2884_v58, %v2882_v42 }
 0xbe2   :  { %2745 = vmatmul.mubr.msk.f32.vlgmr.msra.gmra.mxu0 %vm367_vm4, %v1168_v59 }
 0xbe3   :  { %2754 = vmatprep.mubr.msk.f32.mxu0 %vm3032_vm3, %v3031_v54 }
 0xbeb   :  { %v1321_v48 = vpop.permute.xlu0 %1320  ;;  %v1487_v60 = vpop.permute.xlu1 %1486 }
 0xbec   :  { %2753 = vmatpush3.xpose.msk.msra.mxu0 %vm367_vm4, %v1321_v48 }
 0xbed   :  { %2762 = vmatprep.subr.mxu0 %v3031_v54 }
 0xbef   :  { %2755 = vmatmul.mubr.msk.f32.vlgmr.msra.gmra.mxu0 %vm367_vm4, %v3356_v56 }
 0xbf0   :  { %2763 = vmatpush3.xpose.msk.msra.mxu0 %vm367_vm4, %v1487_v60  ;;  %2764 = vmatprep.mubr.msk.f32.mxu0 %vm3032_vm3, %v3031_v54 }
 0xbf1   :  { %2772 = vmatprep.subr.mxu0 %v3031_v54 }
 0xbf8   :  { %v1485_v62 = vpop.permute.xlu0 %1484 }
 0xbf9   :  { %2765 = vmatmul.mubr.msk.f32.vlgmr.msra.gmra.mxu0 %vm367_vm4, %v1485_v62 }
 0xbfa   :  { %2773 = vmatpush3.msra.mxu0 %v3270_v40  ;;  %2774 = vmatprep.mubr.msk.f32.mxu0 %vm3032_vm3, %v3031_v54 }
 0xbfb   :  { %2782 = vmatprep.subr.mxu0 %v3031_v54 }
 0xca2   :  { %v1241_v2 = vpop.f32.mrf.mxu0 }
 0xca3   :  { %2750 = vmatmul.mubr.msk.f32.vlgmr.msra.gmra.mxu1 %vm367_vm4, %v1241_v2 }
 0xca4   :  { %v2746_v3 = vpop.f32.mrf.mxu0  ;;  %2759 = vmatprep.mubr.msk.f32.mxu1 %vm3032_vm3, %v3031_v54 }
 0xcaf   :  { %v1393_v40 = vpop.f32.mrf.mxu0 }
 0xcb0   :  { %v1394_v4 = vadd.f32 %v1393_v40, %v3237_v10 }
 0xcb1   :  { %v2756_v5 = vpop.f32.mrf.mxu0 }
 0xcb2   :  { %v1397_v6 = vsel %vm367_vm4, %v1394_v4, -inf }
 0xcb3   :  { %1398 = vmax.xlane.f32.xlu0 %v1397_v6 }
 0xcb9   :  { %v1558_v7 = vpop.f32.mrf.mxu0 }
 0xcba   :  { %v1559_v61 = vadd.f32 %v1558_v7, %v3237_v10 }
 0xcbb   :  { %v2766_v9 = vpop.f32.mrf.mxu0 }
 0xcbc   :  { %v1562_v11 = vsel %vm367_vm4, %v1559_v61, -inf }
 0xcbd   :  { %1563 = vmax.xlane.f32.xlu1 %v1562_v11 }
 0xcce   :  { %1573 = vrot.lane.b32.xlu1 %v3177_v34, %s3035_s21 }
 0xcd2   :  { %1795 = vrot.lane.b32.xlu1 %v3356_v56, %s3037_s2 }
 0xd3c   :  { %v1399_v12 = vpop.xlane.xlu0 %1398 }
 0xd3d   :  { %v1400_v13 = vsub.f32 %v1394_v4, %v1399_v12 }
 0xd3f   :  { %v1401_v14 = vmul.f32 1.442695, %v1400_v13 }
 0xd41   :  { %2885 = vpow2.f32 %v1401_v14 }
 0xd46   :  { %v1564_v15 = vpop.xlane.xlu1 %1563 }
 0xd47   :  { %v1565_v16 = vsub.f32 %v1559_v61, %v1564_v15 }
 0xd49   :  { %v1566_v17 = vmul.f32 1.442695, %v1565_v16 }
 0xd4a   :  { %v1574_v30 = vpop.permute.xlu1 %1573 }
 0xd4b   :  { %2887 = vpow2.f32 %v1566_v17 }
 0xd4e   :  { %v2886_v18 = vpop.eup %2885 }
 0xd4f   :  { %v1403_v19 = vsel %vm367_vm4, %v2886_v18, 0.0 }
 0xd50   :  { %1404 = vadd.xlane.f32.xlu0 %v1403_v19 }
 0xd58   :  { %v2888_v20 = vpop.eup %2887 }
 0xd59   :  { %v1568_v21 = vsel %vm367_vm4, %v2888_v20, 0.0 }
 0xd5a   :  { %1569 = vadd.xlane.f32.xlu0 %v1568_v21 }
 0xd63   :  { %v1314_v22 = vpop.f32.mrf.mxu1 }
 0xd64   :  { %v3397_v23 = vadd.f32 %v1314_v22, %v3342_v35 }
 0xd65   :  { %v2751_v24 = vpop.f32.mrf.mxu1 }
 0xd70   :  { %1408 = vrot.lane.b32.xlu0 %v3177_v34, %s3038_s3 }
 0xd74   :  { %1797 = vrot.lane.b32.xlu0 %v3347_v47, %s3036_s22 }
 0xdd9   :  { %v1405_v25 = vpop.xlane.xlu0 %1404 }
 0xdda   :  { %2889 = vrcp.f32 %v1405_v25 }
 0xde3   :  { %v1570_v26 = vpop.xlane.xlu0 %1569 }
 0xde4   :  { %2891 = vrcp.f32 %v1570_v26 }
 0xde7   :  { %v2890_v27 = vpop.eup %2889  ;;  %v1409_v28 = vpop.permute.xlu0 %1408 }
 0xde8   :  { %2758 = vmatpush3.msra.mxu1 %v1409_v28  ;;  %v1407_v29 = vmul.f32 %v2890_v27, %v2886_v18 }
 0xde9   :  { %2767 = vmatprep.subr.mxu1 %v3031_v54 }
 0xdea   :  { %2760 = vmatmul.mubr.msk.f32.vlgmr.msra.gmra.mxu1 %vm367_vm4, %v1407_v29 }
 0xdeb   :  { %2768 = vmatpush3.msra.mxu1 %v1574_v30  ;;  %2769 = vmatprep.mubr.msk.f32.mxu1 %vm3032_vm3, %v3031_v54  ;;  %v1798_v37 = vpop.permute.xlu0 %1797 }
 0xdec   :  { %2777 = vmatprep.subr.mxu1 %v3031_v54 }
 0xdf1   :  { %v2892_v31 = vpop.eup %2891 }
 0xdf2   :  { %v1572_v32 = vmul.f32 %v2892_v31, %v2888_v20 }
 0xdf4   :  { %2770 = vmatmul.mubr.msk.f32.vlgmr.msra.gmra.mxu1 %vm367_vm4, %v1572_v32 }
 0xdf5   :  { %2778 = vmatpush3.msra.mxu1 %v3264_v39  ;;  %2779 = vmatprep.mubr.msk.f32.mxu1 %vm3032_vm3, %v3031_v54  ;;  %v1796_v39 = vpop.permute.xlu1 %1795 }
 0xdf6   :  { %2787 = vmatprep.subr.mxu1 %v3031_v54 }
 0xeaa   :  { %v1480_v35 = vpop.f32.mrf.mxu1 }
 0xeab   :  { %2780 = vmatmul.mubr.msk.f32.vlgmr.msra.gmra.mxu1 %vm367_vm4, %v1480_v35 }
 0xeac   :  { %v2761_v33 = vpop.f32.mrf.mxu1  ;;  %2789 = vmatprep.mubr.msk.f32.mxu1 %vm3032_vm3, %v3031_v54 }
 0xeb4   :  { %v1645_v36 = vpop.f32.mrf.mxu1 }
 0xeb5   :  { %2775 = vmatmul.mubr.msk.f32.vlgmr.msra.gmra.mxu0 %vm367_vm4, %v1645_v36 }
 0xeb6   :  { %2783 = vmatpush3.xpose.msk.msra.mxu0 %vm367_vm4, %v1798_v37  ;;  %v2771_v38 = vpop.f32.mrf.mxu1  ;;  %2784 = vmatprep.mubr.msk.f32.mxu0 %vm3032_vm3, %v3031_v54 }
 0xeb7   :  { %2792 = vmatprep.subr.mxu0 %v3031_v54 }
 0xeb9   :  { %2785 = vmatmul.mubr.msk.f32.vlgmr.msra.gmra.mxu0 %vm367_vm4, %v1796_v39 }
 0xeba   :  { %2793 = vmatpush3.msra.mxu0 %v3314_v8  ;;  %2794 = vmatprep.mubr.msk.f32.mxu0 %vm3032_vm3, %v3031_v54 }
 0xebb   :  { %2802 = vmatprep.subr.mxu0 %v3031_v54 }
 0xf6b   :  { %v1791_v41 = vpop.f32.mrf.mxu1 }
 0xf6d   :  { %v2781_v42 = vpop.f32.mrf.mxu1 }
 0xf75   :  { %v1718_v43 = vpop.f32.mrf.mxu0 }
 0xf76   :  { %v1792_v44 = vadd.f32 %v1791_v41, %v1718_v43  ;;  %v2601_v41 = vld [vmem:[%s3548_s13] ss:$0 sm:$0xff] }
 0xf77   :  { %v2776_v45 = vpop.f32.mrf.mxu0  ;;  %v2602_v43 = vld [vmem:[%s3549_s14] ss:$0 sm:$0xff] }
 0xf79   :  { %v1869_v46 = vpop.f32.mrf.mxu0 }
 0xf7a   :  { %v1870_v49 = vadd.f32 %v1869_v46, %v3237_v10  ;;  %v2331_v46 = vld [vmem:[%s3542_s7 + $0x18] sm:$0xff] }
 0xf7b   :  { %v2786_v50 = vpop.f32.mrf.mxu0 }
 0xf7c   :  { %v1873_v51 = vsel %vm367_vm4, %v1870_v49, -inf  ;;  %v2329_v50 = vld [vmem:[%s3542_s7 + $0x8] sm:$0xff] }
 0xf7d   :  { %1874 = vmax.xlane.f32.xlu0 %v1873_v51  ;;  %v2328_v51 = vld [vmem:[%s3542_s7] sm:$0xff] }
 0xf93   :  { %1884 = vrot.lane.b32.xlu0 %v3177_v34, %s3039_s29 }
 0xf97   :  { %2034 = vrot.lane.b32.xlu0 %v3356_v56, %s3040_s30 }
0x1006   :  { %v1875_v8 = vpop.xlane.xlu0 %1874 }
0x1007   :  { %v1876_v52 = vsub.f32 %v1870_v49, %v1875_v8  ;;  %v2330_v49 = vld [vmem:[%s3542_s7 + $0x10] sm:$0xff] }
0x1009   :  { %v1877_v53 = vmul.f32 1.442695, %v1876_v52 }
0x100a   :  { %v1885_v55 = vpop.permute.xlu0 %1884 }
0x100b   :  { %2893 = vpow2.f32 %v1877_v53  ;;  %2788 = vmatpush3.msra.mxu1 %v1885_v55 }
0x100c   :  { %2797 = vmatprep.subr.mxu1 %v3031_v54 }
0x100e   :  { %v2035_v62 = vpop.permute.xlu0 %2034 }
0x1018   :  { %v2894_v57 = vpop.eup %2893 }
0x1019   :  { %v1879_v58 = vsel %vm367_vm4, %v2894_v57, 0.0 }
0x101a   :  { %1880 = vadd.xlane.f32.xlu1 %v1879_v58 }
0x102b   :  { %2036 = vrot.lane.b32.xlu1 %v3347_v47, %s3041_s16  ;;  %v2600_v47 = vld [vmem:[%s3541_s6] ss:$0 sm:$0xff] }
0x102c   :  { %v2280_v40 = vadd.f32 %v2600_v47, %v3397_v23 }
0x102e   :  { %v3454_v6 = vadd.f32 %v2280_v40, %v3145_v0  ;;  %v2444_v40 = vld [vmem:[%s3544_s9] sm:$0xff] }
0x1030   :  { %v2286_v61 = vsel %vm113_vm0, %v3454_v6, 0.0 }
0x10a3   :  { %v1881_v59 = vpop.xlane.xlu1 %1880 }
0x10a4   :  { %2895 = vrcp.f32 %v1881_v59 }
0x10a7   :  { %v2037_v56 = vpop.permute.xlu1 %2036 }
0x10b1   :  { %v2896_v48 = vpop.eup %2895 }
0x10b2   :  { %v1883_v60 = vmul.f32 %v2896_v48, %v2894_v57  ;;  %v2451_v48 = vld [vmem:[%s3544_s9 + $0x38] sm:$0xff] }
0x10b4   :  { %2790 = vmatmul.mubr.msk.f32.vlgmr.msra.gmra.mxu1 %vm367_vm4, %v1883_v60  ;;  %v2450_v60 = vld [vmem:[%s3544_s9 + $0x30] sm:$0xff] }
0x10b5   :  { %2798 = vmatpush3.xpose.msk.msra.mxu1 %vm367_vm4, %v2037_v56  ;;  %2799 = vmatprep.mubr.msk.f32.mxu1 %vm3032_vm3, %v3031_v54  ;;  %v2449_v56 = vld [vmem:[%s3544_s9 + $0x28] sm:$0xff] }
0x10b6   :  { %2807 = vmatprep.subr.mxu1 %v3031_v54 }
0x10b8   :  { %2800 = vmatmul.mubr.msk.f32.vlgmr.msra.gmra.mxu1 %vm367_vm4, %v2035_v62  ;;  %v2448_v62 = vld [vmem:[%s3544_s9 + $0x20] sm:$0xff] }
0x10b9   :  { %2808 = vmatpush3.msra.mxu1 %v3379_v63  ;;  %2809 = vmatprep.mubr.msk.f32.mxu1 %vm3032_vm3, %v3031_v54 }
0x10ba   :  { %2823 = vmatprep.subr.mxu1 %v2451_v48 }
0x1174   :  { %v1956_v2 = vpop.f32.mrf.mxu1 }
0x1175   :  { %2795 = vmatmul.mubr.msk.f32.vlgmr.msra.gmra.mxu0 %vm367_vm4, %v1956_v2  ;;  %v2446_v2 = vld [vmem:[%s3544_s9 + $0x10] sm:$0xff] }
0x1176   :  { %v2791_v3 = vpop.f32.mrf.mxu1  ;;  %2804 = vmatprep.mubr.msk.f32.mxu0 %vm3032_vm3, %v3031_v54 }
0x1177   :  { %v2445_v3 = vld [vmem:[%s3544_s9 + $0x8] sm:$0xff] }
0x1178   :  { %v2108_v4 = vpop.f32.mrf.mxu1 }
0x1179   :  { %v2109_v5 = vadd.f32 %v2108_v4, %v3237_v10  ;;  %v2603_v4 = vld [vmem:[%s3543_s8] ss:$0 sm:$0xff] }
0x117a   :  { %v2801_v63 = vpop.f32.mrf.mxu1 }
0x117b   :  { %v2112_v7 = vsel %vm367_vm4, %v2109_v5, -inf }
0x117c   :  { %2113 = vmax.xlane.f32.xlu1 %v2112_v7 }
0x1180   :  { %2287 = vadd.xlane.f32.xlu1 %v2286_v61 }
0x1205   :  { %v2114_v9 = vpop.xlane.xlu1 %2113 }
0x1206   :  { %v2115_v11 = vsub.f32 %v2109_v5, %v2114_v9 }
0x1208   :  { %v2116_v12 = vmul.f32 1.442695, %v2115_v11 }
0x1209   :  { %v2288_v21 = vpop.xlane.xlu1 %2287 }
0x120a   :  { %2897 = vpow2.f32 %v2116_v12  ;;  %v2292_v22 = vmul.f32 0.03125, %v2288_v21  ;;  %v2608_v21 = vld [vmem:[%s3545_s10] ss:$0 sm:$0xff] }
0x120c   :  { %v2294_v25 = vsub.f32 %v3454_v6, %v2292_v22 }
0x120e   :  { %v2296_v29 = vmul.f32 %v2294_v25, %v2294_v25 }
0x1210   :  { %v2298_v30 = vsel %vm113_vm0, %v2296_v29, 0.0 }
0x1217   :  { %v2898_v54 = vpop.eup %2897 }
0x1218   :  { %v2118_v13 = vsel %vm367_vm4, %v2898_v54, 0.0 }
0x1219   :  { %2119 = vadd.xlane.f32.xlu0 %v2118_v13 }
0x122f   :  { %2123 = vrot.lane.b32.xlu0 %v3177_v34, %s3042_s18 }
0x1235   :  { %v2029_v0 = vpop.f32.mrf.mxu0 }
0x1236   :  { %v2033_v10 = vadd.f32 %v2029_v0, %v1792_v44 }
0x1237   :  { %v2796_v14 = vpop.f32.mrf.mxu0 }
0x12a2   :  { %v2120_v15 = vpop.xlane.xlu0 %2119 }
0x12a3   :  { %2899 = vrcp.f32 %v2120_v15 }
0x12a6   :  { %v2124_v16 = vpop.permute.xlu0 %2123 }
0x12a7   :  { %2803 = vmatpush3.msra.mxu0 %v2124_v16 }
0x12a8   :  { %2812 = vmatprep.subr.mxu0 %v2331_v46 }
0x12b0   :  { %v2900_v17 = vpop.eup %2899 }
0x12b1   :  { %v2122_v18 = vmul.f32 %v2900_v17, %v2898_v54 }
0x12b3   :  { %2805 = vmatmul.mubr.msk.f32.vlgmr.msra.gmra.mxu0 %vm367_vm4, %v2122_v18 }
0x12b4   :  { %2813 = vmatpush3.msra.mxu0 %v2331_v46 }
0x12b5   :  { %2814 = vmatprep.subr.mxu0 %v2330_v49 }
0x12b6   :  { %2815 = vmatpush3.msra.mxu0 %v2330_v49 }
0x12b7   :  { %2816 = vmatprep.subr.mxu0 %v2329_v50 }
0x12b8   :  { %2817 = vmatpush3.msra.mxu0 %v2329_v50 }
0x12b9   :  { %2818 = vmatprep.subr.mxu0 %v2328_v51 }
0x12ba   :  { %2819 = vmatpush3.msra.mxu0 %v2328_v51 }
0x1373   :  { %v2195_v19 = vpop.f32.mrf.mxu0 }
0x1374   :  { %2810 = vmatmul.mubr.msk.f32.vlgmr.msra.gmra.mxu1 %vm367_vm4, %v2195_v19 }
0x1375   :  { %v2806_v20 = vpop.f32.mrf.mxu0  ;;  %2824 = vmatpush3.msra.mxu1 %v2451_v48 }
0x1376   :  { %2825 = vmatprep.subr.mxu1 %v2450_v60 }
0x1377   :  { %2826 = vmatpush3.msra.mxu1 %v2450_v60 }
0x1378   :  { %2827 = vmatprep.subr.mxu1 %v2449_v56 }
0x1379   :  { %2828 = vmatpush3.msra.mxu1 %v2449_v56 }
0x137a   :  { %2829 = vmatprep.subr.mxu1 %v2448_v62 }
0x137b   :  { %2830 = vmatpush3.msra.mxu1 %v2448_v62 }
0x1434   :  { %v2268_v23 = vpop.f32.mrf.mxu1 }
0x1435   :  { %v2272_v24 = vadd.f32 %v2268_v23, %v2033_v10 }
0x1436   :  { %v2811_v34 = vpop.f32.mrf.mxu1 }
0x1437   :  { %v2281_v26 = vadd.f32 %v2600_v47, %v2272_v24  ;;  %v2447_v47 = vld [vmem:[%s3544_s9 + $0x18] sm:$0xff] }
0x1438   :  { %2831 = vmatprep.subr.mxu1 %v2447_v47 }
0x1439   :  { %v3466_v27 = vadd.f32 %v2281_v26, %v3147_v1  ;;  %2832 = vmatpush3.msra.mxu1 %v2447_v47 }
0x143a   :  { %2833 = vmatprep.subr.mxu1 %v2446_v2 }
0x143b   :  { %v2289_v28 = vsel %vm113_vm0, %v3466_v27, 0.0  ;;  %2834 = vmatpush3.msra.mxu1 %v2446_v2 }
0x143c   :  { %2290 = vadd.xlane.f32.xlu1 %v2289_v28  ;;  %2835 = vmatprep.subr.mxu1 %v2445_v3 }
0x143d   :  { %2836 = vmatpush3.msra.mxu1 %v2445_v3 }
0x143e   :  { %2837 = vmatprep.subr.mxu1 %v2444_v40 }
0x143f   :  { %2838 = vmatpush3.msra.mxu1 %v2444_v40 }
0x1440   :  { %2299 = vadd.xlane.f32.xlu1 %v2298_v30 }
0x14c5   :  { %v2291_v31 = vpop.xlane.xlu1 %2290 }
0x14c6   :  { %v2293_v32 = vmul.f32 0.03125, %v2291_v31 }
0x14c8   :  { %v2295_v35 = vsub.f32 %v3466_v27, %v2293_v32 }
0x14c9   :  { %v2300_v33 = vpop.xlane.xlu1 %2299 }
0x14ca   :  { %v2304_v36 = vmul.f32 0.03125, %v2300_v33  ;;  %v2297_v37 = vmul.f32 %v2295_v35, %v2295_v35 }
0x14cc   :  { %v2306_v38 = vadd.f32 1e-05, %v2304_v36  ;;  %v2301_v39 = vsel %vm113_vm0, %v2297_v37, 0.0 }
0x14cd   :  { %2302 = vadd.xlane.f32.xlu1 %v2301_v39 }
0x14ce   :  { %2901 = vrsqrt.f32 %v2306_v38 }
0x14db   :  { %v2902_v1 = vpop.eup %2901 }
0x14dc   :  { %v2310_v42 = vmul.f32 %v2902_v1, %v2294_v25 }
0x14de   :  { %v2318_v44 = vmul.f32 %v2601_v41, %v2310_v42 }
0x14e0   :  { %v2326_v45 = vadd.f32 %v2602_v43, %v2318_v44 }
0x14e2   :  { %2820 = vmatprep.mubr.msk.f32.mxu0 %vm113_vm0, %v2326_v45 }
0x1556   :  { %v2303_v8 = vpop.xlane.xlu1 %2302 }
0x1557   :  { %v2305_v52 = vmul.f32 0.03125, %v2303_v8 }
0x1559   :  { %v2307_v53 = vadd.f32 1e-05, %v2305_v52 }
0x155b   :  { %2903 = vrsqrt.f32 %v2307_v53 }
0x1568   :  { %v2904_v55 = vpop.eup %2903 }
0x1569   :  { %v2311_v57 = vmul.f32 %v2904_v55, %v2295_v35 }
0x156b   :  { %v2319_v58 = vmul.f32 %v2601_v41, %v2311_v57 }
0x156d   :  { %v2327_v59 = vadd.f32 %v2602_v43, %v2319_v58 }
0x156f   :  { %2821 = vmatmul.mubr.msk.f32.vlgmr.msra.gmra.mxu0 %vm113_vm0, %v2327_v59 }
0x162f   :  { %v2822_v5 = vpop.f32.mrf.mxu0 }
0x1630   :  { %v2417_v63 = vadd.f32 %v2822_v5, %v2603_v4 }
0x1631   :  { %v2411_v7 = vpop.f32.mrf.mxu0 }
0x1632   :  { %v2433_v61 = vmax.f32 %v2417_v63, 0.0  ;;  %v2412_v9 = vadd.f32 %v2603_v4, %v2411_v7  ;;  %v2607_v54 = vmul.f32 -1.442695, %v2417_v63 }
0x1634   :  { %v2432_v11 = vmax.f32 %v2412_v9, 0.0  ;;  %2438 = vrot.lane.b32.xlu0 %v2433_v61, %s3038_s3  ;;  %v2606_v12 = vmul.f32 -1.442695, %v2412_v9 }
0x1636   :  { %2436 = vrot.lane.b32.xlu1 %v2432_v11, %s3038_s3  ;;  %2905 = vpow2.f32 %v2606_v12  ;;  %s3043_s3 = smov [#allocation10]  }
0x1637   :  { %2907 = vpow2.f32 %v2607_v54  ;;  %s2550_s2 = sshll.u32 %s3043_s3, 4  ;;  %s2551_s2 = int_to_ptr.vmem [resolvable:$true] %s2550_s2 }
0x1638   :  { %s2993_s23 = scalar_lea.vmem %s2551_s2, 256  ;;  %p2998_p7 = scmp.lt.s32.totalorder %s2551_s2, %s2551_s2 }
0x1639   :  { %p2994_p6 = scmp.ne.s32.totalorder %s2551_s2, %s2993_s23  ;;  %p2999_p8 = scmp.lt.s32.totalorder %s2993_s23, %s2993_s23 }
0x163b   :  { %p3000_p9 = por %p2999_p8, %p2998_p7 }
0x163d   :  { %p3001_p10 = pnand %p3000_p9, %p2994_p6 }
0x1643   :  { %v2906_v13 = vpop.eup %2905 }
0x1644   :  { %v2908_v0 = vpop.eup %2907  ;;  %v2426_v10 = vadd.f32 1.0, %v2906_v13 }
0x1645   :  { %v2427_v14 = vadd.f32 1.0, %v2908_v0 }
0x1646   :  { %2909 = vrcp.f32 %v2426_v10 }
0x1647   :  { %2911 = vrcp.f32 %v2427_v14 }
0x1653   :  { %v2910_v16 = vpop.eup %2909 }
0x1654   :  { %v2912_v18 = vpop.eup %2911 }
0x16a6   :  { %v2439_v15 = vpop.permute.xlu0 %2438 }
0x16a7   :  { %v2443_v20 = vmul.f32 %v2912_v18, %v2439_v15 }
0x16a8   :  { %v2437_v17 = vpop.permute.xlu1 %2436 }
0x16a9   :  { %v2442_v19 = vmul.f32 %v2910_v16, %v2437_v17 }
0x16ab   :  { %2839 = vmatprep.mubr.msk.f32.mxu1 %vm2459_vm5, %v2442_v19 }
0x16ac   :  { %2840 = vmatmul.mubr.msk.f32.vlgmr.msra.gmra.mxu1 %vm2459_vm5, %v2443_v20 }
0x176c   :  { %v2841_v22 = vpop.f32.mrf.mxu1 }
0x176d   :  { %v2538_v23 = vadd.f32 %v2841_v22, %v2608_v21 }
0x176e   :  { %v2532_v24 = vpop.f32.mrf.mxu1 }
0x176f   :  { %v2542_v34 = vadd.f32 %v2538_v23, %v3466_v27  ;;  %v2533_v25 = vadd.f32 %v2608_v21, %v2532_v24 }
0x1771   :  { %2544 = vst.msk [vmem:[#allocation10 + $0x8] sm:$0xff] %vm113_vm0, %v2542_v34  ;;  %v2541_v26 = vadd.f32 %v2533_v25, %v3454_v6 }
0x1773   :  { %2543 = vst.msk [vmem:[#allocation10] sm:$0xff] %vm113_vm0, %v2541_v26 }
0x1774   :  { %3004 = shalt.err (!%p3001_p10)
}
0x1775   :  { %2556 = dma.vmem_to_hbm [thread:$0]  %s2551_s2, 256, %s3550_s15, [#allocation4], %s3023_s26, %s3023_s26, %s3024_s27  }
0x1776   :  { %3019 = dma.done.wait [#allocation4], 256  }
0x1777   :  { %3020 = vsyncadd [#allocation4], 4294967040 }
0x1778   :  { %2560 = vsyncpa [#allocation3], 1 }
0x1779   :  { %2561 = vsyncpa [#allocation6], 1 }
0x177a   :  { %2562 = vsyncpa [#allocation9], 1 }
0x177b   :  { %2563 = vsyncpa [#allocation4], 1 }

</bundles_post_ra>
